<compile_context>
chip_gen: v7x
topology: tpu7x:2x2x1
jax: 0.10.0
libtpu: 0.0.40
codegen_flags: <defaults>
</compile_context>

<pallas_src>
import math
import functools

import numpy as np
import jax
import jax.numpy as jnp
from jax import lax
from jax.experimental import pallas as pl
from jax.experimental.pallas import tpu as pltpu


# ----------------------------------------------------------------------------
# init-time parameter construction (mirrors Loss.__init__ / rotatableKernel /
# generateHessianKernel2) -- plain numpy, deterministic, no file loading.
# ----------------------------------------------------------------------------
def _rotatable_kernel(wsize, sigma):
    k = np.linspace(-wsize, wsize, 2 * wsize + 1)[None, :]
    g = np.exp(-(k ** 2) / (2 * sigma ** 2))
    gp = -(k / sigma) * np.exp(-(k ** 2) / (2 * sigma ** 2))
    return g.T * gp, gp.T * g


def generate_hessian_kernel2(sigma, md, nd, angle_offset):
    wsize = math.ceil(3 * sigma)
    ksize = 2 * (2 * wsize + 1) - 1
    gx, gy = _rotatable_kernel(wsize, sigma)
    gx_f = np.fft.fft2(gx, s=(md, nd))
    gy_f = np.fft.fft2(gy, s=(md, nd))
    n_ang = len(angle_offset)
    dgxx = np.zeros((n_ang, ksize, ksize), np.float32)
    dgyy = np.zeros((n_ang, ksize, ksize), np.float32)
    dgxy = np.zeros((n_ang, ksize, ksize), np.float32)
    for i, ang in enumerate(angle_offset):
        a = math.cos(-ang / 180 * math.pi)
        b = math.sin(-ang / 180 * math.pi)
        c = math.cos(-ang / 180 * math.pi + math.pi / 2)
        d = math.sin(-ang / 180 * math.pi + math.pi / 2)
        fx = a * gx_f + b * gy_f
        fy = c * gx_f + d * gy_f
        dgxx[i] = np.fft.ifft2(fx * fx).real[:ksize, :ksize].astype(np.float32)
        dgyy[i] = np.fft.ifft2(fy * fy).real[:ksize, :ksize].astype(np.float32)
        dgxy[i] = np.fft.ifft2(fy * fx).real[:ksize, :ksize].astype(np.float32)
    return dgxx, dgyy, dgxy, ksize


def _toeplitz_bank(weights, W, lane_pad=128):
    """Banded Toeplitz bank for valid KxK cross-correlation.

    weights: (n_k, K, K).  Returns T of shape (K, W, A_pad) such that
      sum_ki  x[i+ki, :] @ T[ki]
    equals [conv_valid(x, weights[a]) for a] concatenated along lanes
    (kernel index major, output column minor).  The lane dim is zero-padded to
    a multiple of `lane_pad` (padding contributes exactly 0 downstream)."""
    n_k, K, _ = weights.shape
    Wo = W - K + 1
    A = n_k * Wo
    A_pad = ((A + lane_pad - 1) // lane_pad) * lane_pad
    T = np.zeros((K, W, A_pad), np.float32)
    j = np.arange(Wo)
    for a in range(n_k):
        for ki in range(K):
            for kj in range(K):
                T[ki, j + kj, a * Wo + j] = weights[a, ki, kj]
    return T


# ----------------------------------------------------------------------------
# Pallas kernel: one image (grid step) per invocation.
# ----------------------------------------------------------------------------
def _loss_kernel(gnnraw_ref, gnn_ref, lr_ref, smooth_ref, tgt_ref, map_ref,
                 sh_ref, sw_ref, const_ref, tall_ref, out_ref, *,
                 H, W, K, eps, n_dd_start, lam_tv, lam_hess):
    f32 = jnp.float32
    bf16 = jnp.bfloat16

    x = gnnraw_ref[0]        # (H, W) f32
    gnn = gnn_ref[0]
    lr = lr_ref[0]
    smooth = smooth_ref[0]
    tgt = tgt_ref[0]
    mp = map_ref[0]

    sh = sh_ref[...]         # (H, H) bf16 banded row box matrix  (|i-j| <= r)
    sw = sw_ref[...]         # (W, W) bf16 banded col box matrix
    inv_n = const_ref[0]     # (H, W) f32  1 / boxfilter(ones)
    smask = const_ref[1]     # (H, W) f32  [::s, ::s] sampling mask

    # ---- guided filter (self-guided: y == x) --------------------------------
    # zero-padded (2r+1)^2 box sum as two banded MXU matmuls; bf16 operands,
    # f32 accumulation (bf16 is a deliberate, documented precision deviation
    # from the f32 torch reference).
    def box(m_bf):                      # (H, W) bf16 -> (H, W) f32
        t = jnp.dot(sh, m_bf, preferred_element_type=f32)
        return jnp.dot(t.astype(bf16), sw, preferred_element_type=f32)

    mean_x = box(x.astype(bf16)) * inv_n
    # E[x^2] - mean^2 in f32; clamp at 0 — true variance is non-negative and a
    # tiny negative cancellation residue would explode through /eps.
    var_x = jnp.maximum(box((x * x).astype(bf16)) * inv_n - mean_x * mean_x, 0.0)
    a_coef = var_x * pl.reciprocal(jnp.maximum(var_x, eps), approx=True)  # EUP
    b_coef = mean_x * (1.0 - a_coef)
    gf = (box(a_coef.astype(bf16)) * inv_n) * x + box(b_coef.astype(bf16)) * inv_n

    # ---- MSE terms (single fused reduction) ---------------------------------
    mse = jnp.sum(jnp.abs(smooth - gf) + jnp.abs(tgt - gnn) * mp * smask)

    # ---- total variation: Dx = [[1,-1]], Dy = [[1],[-1]] ---------------------
    d_gnn = gnn - tgt
    d_lr = lr - tgt
    tv = (jnp.sum(jnp.abs(gnn[:, :-1] - gnn[:, 1:])
                  + jnp.abs(lr[:, :-1] - lr[:, 1:]))
          + jnp.sum(jnp.abs(d_gnn[:-1, :] - d_gnn[1:, :])
                    + jnp.abs(d_lr[:-1, :] - d_lr[1:, :])))

    # ---- Hessian regularisation ---------------------------------------------
    # One merged Toeplitz bank [xx | yy | 2*xy] applied to [gnn; lr; tgt]
    # stacked along sublanes: K matmuls/image.  On the yy/xy lanes,
    # conv(x - tgt, k) = conv(x, k) - conv(tgt, k) (linearity).
    Ho = H - K + 1
    L3 = 3 * H - K + 1
    A_pad = tall_ref.shape[-1]
    xs = jnp.concatenate([gnn, lr, tgt], axis=0).astype(bf16)     # (3H, W), cast once
    acc = jnp.zeros((L3, A_pad), f32)
    for ki in range(K):                                           # static unroll
        acc = acc + jnp.dot(xs[ki:ki + L3, :], tall_ref[ki],
                            preferred_element_type=f32)
    conv_g = acc[0:Ho]               # gnn ⊛ all kernels
    conv_l = acc[H:H + Ho]           # lr  ⊛ all kernels
    conv_t = acc[2 * H:2 * H + Ho]   # tgt ⊛ all kernels
    lane = lax.broadcasted_iota(jnp.int32, (Ho, A_pad), 1)
    m_dd = (lane >= n_dd_start).astype(f32)     # yy/xy lanes act on (x - tgt)
    hess = jnp.sum(jnp.abs(conv_g - m_dd * conv_t)
                   + jnp.abs(conv_l - m_dd * conv_t))

    loss_b = mse + lam_tv * tv + lam_hess * hess
    # lane-dense (8,128) output tile; the wrapper reads element [0, 0]
    out_ref[...] = jnp.broadcast_to(loss_b, (1, 8, 128)).astype(f32)


# ----------------------------------------------------------------------------
# Wrapper (parameter setup + pallas_call)
# ----------------------------------------------------------------------------
def make_loss_fn(train_params, shape_params):
    lam_tv = float(train_params["lambda_tv"])
    lam_hess = float(train_params["lambda_hessian"])
    sampling = int(train_params["sampling_in_MSEloss"])
    iso = bool(train_params["isotropic_hessian"])
    r = int(train_params["GF_kernel_size_train"])
    eps = float(train_params["loss_eps"])
    angle_offset = shape_params["angle_offset"]
    md = shape_params["md"] if shape_params["is_vertical"] else shape_params["nd"]
    nd = shape_params["nd"] if shape_params["is_vertical"] else shape_params["md"]
    sigma = float(train_params["hessian_kernel_sigma"])
    # TODO(synk): sigma > 0.5 path (generateHessianKernel + scipy.ndimage.rotate)
    # not reproduced; only the FFT-based generateHessianKernel2 path is supported.
    assert sigma <= 0.5
    dgxx, dgyy, dgxy, K = generate_hessian_kernel2(sigma, md, nd, angle_offset)
    n_ang = len(angle_offset)

    def loss_fn(outputGNNraw, outputGNN, outputLR, smoothedTarget, targets, map_):
        B, C, H, W = outputGNNraw.shape
        assert C == 1 and H >= K and W >= K
        sq = lambda t: jnp.asarray(t, jnp.float32).reshape(B, H, W)

        # ---- batch-invariant constants, built once (hoisted out of kernel) --
        ih = np.arange(H)
        iw = np.arange(W)
        cnt_h = np.minimum(ih + r, H - 1) - np.maximum(ih - r, 0) + 1
        cnt_w = np.minimum(iw + r, W - 1) - np.maximum(iw - r, 0) + 1
        inv_n = (1.0 / (cnt_h[:, None] * cnt_w[None, :])).astype(np.float32)
        smask = np.zeros((H, W), np.float32)
        smask[::sampling, ::sampling] = 1.0
        consts_hw = jnp.asarray(np.stack([inv_n, smask], 0))              # (2,H,W) f32
        sh = jnp.asarray(np.abs(ih[:, None] - ih[None, :]) <= r, jnp.bfloat16)
        sw = jnp.asarray(np.abs(iw[:, None] - iw[None, :]) <= r, jnp.bfloat16)

        # merged Toeplitz bank [xx | yy | 2*xy]; |2*conv| == 2*|conv| so the
        # isotropic factor folds into the xy weights.  Single 128-lane padding.
        w_all = np.concatenate([dgxx, dgyy, dgxy * (2.0 if iso else 1.0)], 0)
        tall_np = _toeplitz_bank(w_all, W)                                # (K, W, A_pad)
        A_pad = tall_np.shape[-1]
        tall = jnp.asarray(tall_np, jnp.bfloat16)
        Wo = W - K + 1
        n_dd_start = n_ang * Wo          # first yy/xy lane

        L3 = 3 * H - K + 1
        # VMEM budget: double-buffered input/output blocks + in-kernel
        # temporaries; capped with headroom for v7x's 64 MiB physical VMEM.
        bytes_blocks = 2 * (6 * H * W * 4 + 2 * H * W * 4 + H * H * 2
                            + W * W * 2 + K * W * A_pad * 2 + 8 * 128 * 4)
        bytes_tmp = 24 * H * W * 4 + 2 * 3 * H * W * 2 + 2 * L3 * A_pad * 4
        vmem_limit = int(min(48 * 2 ** 20,
                             max(16 * 2 ** 20, 2 * (bytes_blocks + bytes_tmp))))

        flops = B * (8 * 2 * H * W * (H + W)          # guided-filter box matmuls
                     + K * 2 * L3 * W * A_pad         # Hessian matmuls
                     + 60 * H * W)                    # elementwise
        bytes_accessed = (6 * B * H * W * 4 + 2 * H * W * 4
                          + (H * H + W * W) * 2 + K * W * A_pad * 2
                          + B * 8 * 128 * 4)

        kernel = functools.partial(
            _loss_kernel, H=H, W=W, K=K, eps=eps, n_dd_start=n_dd_start,
            lam_tv=lam_tv, lam_hess=lam_hess)

        img_spec = pl.BlockSpec((1, H, W), lambda b: (b, 0, 0))
        partials = pl.pallas_call(
            kernel,
            out_shape=jax.ShapeDtypeStruct((B, 8, 128), jnp.float32),
            grid=(B,),
            in_specs=[img_spec] * 6 + [
                pl.BlockSpec((H, H), lambda b: (0, 0)),               # sh
                pl.BlockSpec((W, W), lambda b: (0, 0)),               # sw
                pl.BlockSpec((2, H, W), lambda b: (0, 0, 0)),         # inv_n, smask
                pl.BlockSpec((K, W, A_pad), lambda b: (0, 0, 0)),     # Toeplitz bank
            ],
            out_specs=pl.BlockSpec((1, 8, 128), lambda b: (b, 0, 0)),
            compiler_params=pltpu.CompilerParams(
                dimension_semantics=("parallel",),
                vmem_limit_bytes=vmem_limit),
            cost_estimate=pl.CostEstimate(
                flops=int(flops), transcendentals=int(B * H * W),
                bytes_accessed=int(bytes_accessed)),
        )(sq(outputGNNraw), sq(outputGNN), sq(outputLR), sq(smoothedTarget),
          sq(targets), sq(map_), sh, sw, consts_hw, tall)
        return jnp.sum(partials[:, 0, 0])

    return loss_fn


if __name__ == "__main__":
    train_params = dict(
        lambda_tv=1.0,
        lambda_hessian=0.5,
        sampling_in_MSEloss=2,
        isotropic_hessian=True,
        hessian_kernel_sigma=0.3,     # <= 0.5 -> generateHessianKernel2 path
        GF_kernel_size_train=3,       # guided-filter radius r
        loss_eps=1e-9,
    )
    B, C, H, W = 2, 1, 16, 16
    shape_params = dict(angle_offset=[-10.0, 0.0, 10.0], is_vertical=True,
                        md=H, nd=W)

    key = jax.random.PRNGKey(0)
    ks = jax.random.split(key, 6)
    shp = (B, C, H, W)
    outputGNNraw = jax.random.uniform(ks[0], shp, jnp.float32)
    outputGNN = jax.random.uniform(ks[1], shp, jnp.float32)
    outputLR = jax.random.uniform(ks[2], shp, jnp.float32)
    smoothedTarget = jax.random.uniform(ks[3], shp, jnp.float32)
    targets = jax.random.uniform(ks[4], shp, jnp.float32)
    map_ = jax.random.uniform(ks[5], shp, jnp.float32)

    loss_fn = make_loss_fn(train_params, shape_params)
    loss = jax.jit(loss_fn)(outputGNNraw, outputGNN, outputLR,
                            smoothedTarget, targets, map_)
    loss = jax.block_until_ready(loss)
    assert bool(jnp.isfinite(loss)), "loss is not finite"
    print("KERNEL_OK")
</pallas_src>

<mosaic_0001>
module attributes {stable_mosaic.version = 11 : i64} {
  func.func @_loss_kernel(%arg0: i32, %arg1: memref<1x16x16xf32, #tpu.memory_space<vmem>>, %arg2: memref<1x16x16xf32, #tpu.memory_space<vmem>>, %arg3: memref<1x16x16xf32, #tpu.memory_space<vmem>>, %arg4: memref<1x16x16xf32, #tpu.memory_space<vmem>>, %arg5: memref<1x16x16xf32, #tpu.memory_space<vmem>>, %arg6: memref<1x16x16xf32, #tpu.memory_space<vmem>>, %arg7: memref<16x16xbf16, #tpu.memory_space<vmem>>, %arg8: memref<16x16xbf16, #tpu.memory_space<vmem>>, %arg9: memref<2x16x16xf32, #tpu.memory_space<vmem>>, %arg10: memref<5x16x128xbf16, #tpu.memory_space<vmem>>, %arg11: memref<1x8x128xf32, #tpu.memory_space<vmem>>) attributes {dimension_semantics = [#tpu.dimension_semantics<parallel>], iteration_bounds = array<i64: 2>, scalar_prefetch = 0 : i64, scratch_operands = 0 : i64, tpu.core_type = #tpu.core_type<tc>, window_params = [{transform_indices = @transform_0, window_bounds = array<i64: 1, 16, 16>}, {transform_indices = @transform_1, window_bounds = array<i64: 1, 16, 16>}, {transform_indices = @transform_2, window_bounds = array<i64: 1, 16, 16>}, {transform_indices = @transform_3, window_bounds = array<i64: 1, 16, 16>}, {transform_indices = @transform_4, window_bounds = array<i64: 1, 16, 16>}, {transform_indices = @transform_5, window_bounds = array<i64: 1, 16, 16>}, {pipeline_mode = #tpu.pipeline_mode<synchronous>, transform_indices = @transform_6, window_bounds = array<i64: 16, 16>}, {pipeline_mode = #tpu.pipeline_mode<synchronous>, transform_indices = @transform_7, window_bounds = array<i64: 16, 16>}, {pipeline_mode = #tpu.pipeline_mode<synchronous>, transform_indices = @transform_8, window_bounds = array<i64: 2, 16, 16>}, {pipeline_mode = #tpu.pipeline_mode<synchronous>, transform_indices = @transform_9, window_bounds = array<i64: 5, 16, 128>}, {transform_indices = @transform_10, window_bounds = array<i64: 1, 8, 128>}]} {
    %c0 = arith.constant 0 : index
    %c0_0 = arith.constant 0 : index
    %c0_1 = arith.constant 0 : index
    %0 = vector.load %arg1[%c0, %c0_0, %c0_1] : memref<1x16x16xf32, #tpu.memory_space<vmem>>, vector<1x16x16xf32>
    %1 = vector.shape_cast %0 : vector<1x16x16xf32> to vector<16x16xf32>
    %c0_2 = arith.constant 0 : index
    %c0_3 = arith.constant 0 : index
    %c0_4 = arith.constant 0 : index
    %2 = vector.load %arg2[%c0_2, %c0_3, %c0_4] : memref<1x16x16xf32, #tpu.memory_space<vmem>>, vector<1x16x16xf32>
    %3 = vector.shape_cast %2 : vector<1x16x16xf32> to vector<16x16xf32>
    %c0_5 = arith.constant 0 : index
    %c0_6 = arith.constant 0 : index
    %c0_7 = arith.constant 0 : index
    %4 = vector.load %arg3[%c0_5, %c0_6, %c0_7] : memref<1x16x16xf32, #tpu.memory_space<vmem>>, vector<1x16x16xf32>
    %5 = vector.shape_cast %4 : vector<1x16x16xf32> to vector<16x16xf32>
    %c0_8 = arith.constant 0 : index
    %c0_9 = arith.constant 0 : index
    %c0_10 = arith.constant 0 : index
    %6 = vector.load %arg4[%c0_8, %c0_9, %c0_10] : memref<1x16x16xf32, #tpu.memory_space<vmem>>, vector<1x16x16xf32>
    %7 = vector.shape_cast %6 : vector<1x16x16xf32> to vector<16x16xf32>
    %c0_11 = arith.constant 0 : index
    %c0_12 = arith.constant 0 : index
    %c0_13 = arith.constant 0 : index
    %8 = vector.load %arg5[%c0_11, %c0_12, %c0_13] : memref<1x16x16xf32, #tpu.memory_space<vmem>>, vector<1x16x16xf32>
    %9 = vector.shape_cast %8 : vector<1x16x16xf32> to vector<16x16xf32>
    %c0_14 = arith.constant 0 : index
    %c0_15 = arith.constant 0 : index
    %c0_16 = arith.constant 0 : index
    %10 = vector.load %arg6[%c0_14, %c0_15, %c0_16] : memref<1x16x16xf32, #tpu.memory_space<vmem>>, vector<1x16x16xf32>
    %11 = vector.shape_cast %10 : vector<1x16x16xf32> to vector<16x16xf32>
    %c0_17 = arith.constant 0 : index
    %c0_18 = arith.constant 0 : index
    %12 = vector.load %arg7[%c0_17, %c0_18] : memref<16x16xbf16, #tpu.memory_space<vmem>>, vector<16x16xbf16>
    %c0_19 = arith.constant 0 : index
    %c0_20 = arith.constant 0 : index
    %13 = vector.load %arg8[%c0_19, %c0_20] : memref<16x16xbf16, #tpu.memory_space<vmem>>, vector<16x16xbf16>
    %c0_21 = arith.constant 0 : index
    %c0_22 = arith.constant 0 : index
    %c0_23 = arith.constant 0 : index
    %14 = vector.load %arg9[%c0_21, %c0_22, %c0_23] : memref<2x16x16xf32, #tpu.memory_space<vmem>>, vector<1x16x16xf32>
    %15 = vector.shape_cast %14 : vector<1x16x16xf32> to vector<16x16xf32>
    %c1 = arith.constant 1 : index
    %c0_24 = arith.constant 0 : index
    %c0_25 = arith.constant 0 : index
    %16 = vector.load %arg9[%c1, %c0_24, %c0_25] : memref<2x16x16xf32, #tpu.memory_space<vmem>>, vector<1x16x16xf32>
    %17 = vector.shape_cast %16 : vector<1x16x16xf32> to vector<16x16xf32>
    %18 = arith.truncf %1 : vector<16x16xf32> to vector<16x16xbf16>
    %cst = arith.constant dense<0.000000e+00> : vector<16x16xf32>
    %19 = tpu.matmul %12, %18, %cst {dimension_numbers = #tpu.dot_dimension_numbers<[1], [0], [0], [1], [0, 0, 1, 1], [], []>} : vector<16x16xbf16>, vector<16x16xbf16>, vector<16x16xf32> -> vector<16x16xf32>
    %20 = arith.truncf %19 : vector<16x16xf32> to vector<16x16xbf16>
    %cst_26 = arith.constant dense<0.000000e+00> : vector<16x16xf32>
    %21 = tpu.matmul %20, %13, %cst_26 {dimension_numbers = #tpu.dot_dimension_numbers<[1], [0], [0], [1], [0, 0, 1, 1], [], []>} : vector<16x16xbf16>, vector<16x16xbf16>, vector<16x16xf32> -> vector<16x16xf32>
    %22 = arith.mulf %21, %15 : vector<16x16xf32>
    %23 = arith.mulf %1, %1 : vector<16x16xf32>
    %24 = arith.truncf %23 : vector<16x16xf32> to vector<16x16xbf16>
    %cst_27 = arith.constant dense<0.000000e+00> : vector<16x16xf32>
    %25 = tpu.matmul %12, %24, %cst_27 {dimension_numbers = #tpu.dot_dimension_numbers<[1], [0], [0], [1], [0, 0, 1, 1], [], []>} : vector<16x16xbf16>, vector<16x16xbf16>, vector<16x16xf32> -> vector<16x16xf32>
    %26 = arith.truncf %25 : vector<16x16xf32> to vector<16x16xbf16>
    %cst_28 = arith.constant dense<0.000000e+00> : vector<16x16xf32>
    %27 = tpu.matmul %26, %13, %cst_28 {dimension_numbers = #tpu.dot_dimension_numbers<[1], [0], [0], [1], [0, 0, 1, 1], [], []>} : vector<16x16xbf16>, vector<16x16xbf16>, vector<16x16xf32> -> vector<16x16xf32>
    %28 = arith.mulf %27, %15 : vector<16x16xf32>
    %29 = arith.mulf %22, %22 : vector<16x16xf32>
    %30 = arith.subf %28, %29 : vector<16x16xf32>
    %cst_29 = arith.constant 0.000000e+00 : f32
    %31 = vector.broadcast %cst_29 : f32 to vector<16x16xf32>
    %32 = arith.maximumf %30, %31 : vector<16x16xf32>
    %cst_30 = arith.constant 9.99999971E-10 : f32
    %33 = vector.broadcast %cst_30 : f32 to vector<16x16xf32>
    %34 = arith.maximumf %32, %33 : vector<16x16xf32>
    %35 = tpu.reciprocal %34 {approx = true} : vector<16x16xf32> -> vector<16x16xf32>
    %36 = arith.mulf %32, %35 : vector<16x16xf32>
    %cst_31 = arith.constant 1.000000e+00 : f32
    %37 = vector.broadcast %cst_31 : f32 to vector<16x16xf32>
    %38 = arith.subf %37, %36 : vector<16x16xf32>
    %39 = arith.mulf %22, %38 : vector<16x16xf32>
    %40 = arith.truncf %36 : vector<16x16xf32> to vector<16x16xbf16>
    %cst_32 = arith.constant dense<0.000000e+00> : vector<16x16xf32>
    %41 = tpu.matmul %12, %40, %cst_32 {dimension_numbers = #tpu.dot_dimension_numbers<[1], [0], [0], [1], [0, 0, 1, 1], [], []>} : vector<16x16xbf16>, vector<16x16xbf16>, vector<16x16xf32> -> vector<16x16xf32>
    %42 = arith.truncf %41 : vector<16x16xf32> to vector<16x16xbf16>
    %cst_33 = arith.constant dense<0.000000e+00> : vector<16x16xf32>
    %43 = tpu.matmul %42, %13, %cst_33 {dimension_numbers = #tpu.dot_dimension_numbers<[1], [0], [0], [1], [0, 0, 1, 1], [], []>} : vector<16x16xbf16>, vector<16x16xbf16>, vector<16x16xf32> -> vector<16x16xf32>
    %44 = arith.mulf %43, %15 : vector<16x16xf32>
    %45 = arith.mulf %44, %1 : vector<16x16xf32>
    %46 = arith.truncf %39 : vector<16x16xf32> to vector<16x16xbf16>
    %cst_34 = arith.constant dense<0.000000e+00> : vector<16x16xf32>
    %47 = tpu.matmul %12, %46, %cst_34 {dimension_numbers = #tpu.dot_dimension_numbers<[1], [0], [0], [1], [0, 0, 1, 1], [], []>} : vector<16x16xbf16>, vector<16x16xbf16>, vector<16x16xf32> -> vector<16x16xf32>
    %48 = arith.truncf %47 : vector<16x16xf32> to vector<16x16xbf16>
    %cst_35 = arith.constant dense<0.000000e+00> : vector<16x16xf32>
    %49 = tpu.matmul %48, %13, %cst_35 {dimension_numbers = #tpu.dot_dimension_numbers<[1], [0], [0], [1], [0, 0, 1, 1], [], []>} : vector<16x16xbf16>, vector<16x16xbf16>, vector<16x16xf32> -> vector<16x16xf32>
    %50 = arith.mulf %49, %15 : vector<16x16xf32>
    %51 = arith.addf %45, %50 : vector<16x16xf32>
    %52 = arith.subf %7, %51 : vector<16x16xf32>
    %53 = math.absf %52 : vector<16x16xf32>
    %54 = arith.subf %9, %3 : vector<16x16xf32>
    %55 = math.absf %54 : vector<16x16xf32>
    %56 = arith.mulf %55, %11 : vector<16x16xf32>
    %57 = arith.mulf %56, %17 : vector<16x16xf32>
    %58 = arith.addf %53, %57 : vector<16x16xf32>
    %59 = vector.shape_cast %58 : vector<16x16xf32> to vector<1x16x16xf32>
    %cst_36 = arith.constant dense<0.000000e+00> : vector<1xf32>
    %60 = vector.multi_reduction <add>, %59, %cst_36 [1, 2] : vector<1x16x16xf32> to vector<1xf32>
    %61 = vector.shape_cast %60 : vector<1xf32> to vector<1x1x1xf32>
    %62 = vector.extract %61[0, 0, 0] : f32 from vector<1x1x1xf32>
    %63 = arith.subf %3, %9 : vector<16x16xf32>
    %64 = arith.subf %5, %9 : vector<16x16xf32>
    %65 = vector.extract_strided_slice %3 {offsets = [0, 0], sizes = [16, 15], strides = [1, 1]} : vector<16x16xf32> to vector<16x15xf32>
    %66 = vector.extract_strided_slice %3 {offsets = [0, 1], sizes = [16, 15], strides = [1, 1]} : vector<16x16xf32> to vector<16x15xf32>
    %67 = arith.subf %65, %66 : vector<16x15xf32>
    %68 = math.absf %67 : vector<16x15xf32>
    %69 = vector.extract_strided_slice %5 {offsets = [0, 0], sizes = [16, 15], strides = [1, 1]} : vector<16x16xf32> to vector<16x15xf32>
    %70 = vector.extract_strided_slice %5 {offsets = [0, 1], sizes = [16, 15], strides = [1, 1]} : vector<16x16xf32> to vector<16x15xf32>
    %71 = arith.subf %69, %70 : vector<16x15xf32>
    %72 = math.absf %71 : vector<16x15xf32>
    %73 = arith.addf %68, %72 : vector<16x15xf32>
    %74 = vector.shape_cast %73 : vector<16x15xf32> to vector<1x16x15xf32>
    %cst_37 = arith.constant dense<0.000000e+00> : vector<1xf32>
    %75 = vector.multi_reduction <add>, %74, %cst_37 [1, 2] : vector<1x16x15xf32> to vector<1xf32>
    %76 = vector.shape_cast %75 : vector<1xf32> to vector<1x1x1xf32>
    %77 = vector.extract %76[0, 0, 0] : f32 from vector<1x1x1xf32>
    %78 = vector.extract_strided_slice %63 {offsets = [0, 0], sizes = [15, 16], strides = [1, 1]} : vector<16x16xf32> to vector<15x16xf32>
    %79 = vector.extract_strided_slice %63 {offsets = [1, 0], sizes = [15, 16], strides = [1, 1]} : vector<16x16xf32> to vector<15x16xf32>
    %80 = arith.subf %78, %79 : vector<15x16xf32>
    %81 = math.absf %80 : vector<15x16xf32>
    %82 = vector.extract_strided_slice %64 {offsets = [0, 0], sizes = [15, 16], strides = [1, 1]} : vector<16x16xf32> to vector<15x16xf32>
    %83 = vector.extract_strided_slice %64 {offsets = [1, 0], sizes = [15, 16], strides = [1, 1]} : vector<16x16xf32> to vector<15x16xf32>
    %84 = arith.subf %82, %83 : vector<15x16xf32>
    %85 = math.absf %84 : vector<15x16xf32>
    %86 = arith.addf %81, %85 : vector<15x16xf32>
    %87 = vector.shape_cast %86 : vector<15x16xf32> to vector<1x15x16xf32>
    %cst_38 = arith.constant dense<0.000000e+00> : vector<1xf32>
    %88 = vector.multi_reduction <add>, %87, %cst_38 [1, 2] : vector<1x15x16xf32> to vector<1xf32>
    %89 = vector.shape_cast %88 : vector<1xf32> to vector<1x1x1xf32>
    %90 = vector.extract %89[0, 0, 0] : f32 from vector<1x1x1xf32>
    %91 = arith.addf %77, %90 : f32
    %92 = tpu.concatenate %3, %5, %9 in 0 : vector<16x16xf32>, vector<16x16xf32>, vector<16x16xf32> -> vector<48x16xf32>
    %93 = arith.truncf %92 : vector<48x16xf32> to vector<48x16xbf16>
    %cst_39 = arith.constant 0.000000e+00 : f32
    %94 = vector.broadcast %cst_39 : f32 to vector<44x128xf32>
    %95 = vector.extract_strided_slice %93 {offsets = [0, 0], sizes = [44, 16], strides = [1, 1]} : vector<48x16xbf16> to vector<44x16xbf16>
    %c0_40 = arith.constant 0 : index
    %c0_41 = arith.constant 0 : index
    %c0_42 = arith.constant 0 : index
    %96 = vector.load %arg10[%c0_40, %c0_41, %c0_42] : memref<5x16x128xbf16, #tpu.memory_space<vmem>>, vector<1x16x128xbf16>
    %97 = vector.shape_cast %96 : vector<1x16x128xbf16> to vector<16x128xbf16>
    %cst_43 = arith.constant dense<0.000000e+00> : vector<44x128xf32>
    %98 = tpu.matmul %95, %97, %cst_43 {dimension_numbers = #tpu.dot_dimension_numbers<[1], [0], [0], [1], [0, 0, 1, 1], [], []>} : vector<44x16xbf16>, vector<16x128xbf16>, vector<44x128xf32> -> vector<44x128xf32>
    %99 = arith.addf %94, %98 : vector<44x128xf32>
    %100 = vector.extract_strided_slice %93 {offsets = [1, 0], sizes = [44, 16], strides = [1, 1]} : vector<48x16xbf16> to vector<44x16xbf16>
    %c1_44 = arith.constant 1 : index
    %c0_45 = arith.constant 0 : index
    %c0_46 = arith.constant 0 : index
    %101 = vector.load %arg10[%c1_44, %c0_45, %c0_46] : memref<5x16x128xbf16, #tpu.memory_space<vmem>>, vector<1x16x128xbf16>
    %102 = vector.shape_cast %101 : vector<1x16x128xbf16> to vector<16x128xbf16>
    %cst_47 = arith.constant dense<0.000000e+00> : vector<44x128xf32>
    %103 = tpu.matmul %100, %102, %cst_47 {dimension_numbers = #tpu.dot_dimension_numbers<[1], [0], [0], [1], [0, 0, 1, 1], [], []>} : vector<44x16xbf16>, vector<16x128xbf16>, vector<44x128xf32> -> vector<44x128xf32>
    %104 = arith.addf %99, %103 : vector<44x128xf32>
    %105 = vector.extract_strided_slice %93 {offsets = [2, 0], sizes = [44, 16], strides = [1, 1]} : vector<48x16xbf16> to vector<44x16xbf16>
    %c2 = arith.constant 2 : index
    %c0_48 = arith.constant 0 : index
    %c0_49 = arith.constant 0 : index
    %106 = vector.load %arg10[%c2, %c0_48, %c0_49] : memref<5x16x128xbf16, #tpu.memory_space<vmem>>, vector<1x16x128xbf16>
    %107 = vector.shape_cast %106 : vector<1x16x128xbf16> to vector<16x128xbf16>
    %cst_50 = arith.constant dense<0.000000e+00> : vector<44x128xf32>
    %108 = tpu.matmul %105, %107, %cst_50 {dimension_numbers = #tpu.dot_dimension_numbers<[1], [0], [0], [1], [0, 0, 1, 1], [], []>} : vector<44x16xbf16>, vector<16x128xbf16>, vector<44x128xf32> -> vector<44x128xf32>
    %109 = arith.addf %104, %108 : vector<44x128xf32>
    %110 = vector.extract_strided_slice %93 {offsets = [3, 0], sizes = [44, 16], strides = [1, 1]} : vector<48x16xbf16> to vector<44x16xbf16>
    %c3 = arith.constant 3 : index
    %c0_51 = arith.constant 0 : index
    %c0_52 = arith.constant 0 : index
    %111 = vector.load %arg10[%c3, %c0_51, %c0_52] : memref<5x16x128xbf16, #tpu.memory_space<vmem>>, vector<1x16x128xbf16>
    %112 = vector.shape_cast %111 : vector<1x16x128xbf16> to vector<16x128xbf16>
    %cst_53 = arith.constant dense<0.000000e+00> : vector<44x128xf32>
    %113 = tpu.matmul %110, %112, %cst_53 {dimension_numbers = #tpu.dot_dimension_numbers<[1], [0], [0], [1], [0, 0, 1, 1], [], []>} : vector<44x16xbf16>, vector<16x128xbf16>, vector<44x128xf32> -> vector<44x128xf32>
    %114 = arith.addf %109, %113 : vector<44x128xf32>
    %115 = vector.extract_strided_slice %93 {offsets = [4, 0], sizes = [44, 16], strides = [1, 1]} : vector<48x16xbf16> to vector<44x16xbf16>
    %c4 = arith.constant 4 : index
    %c0_54 = arith.constant 0 : index
    %c0_55 = arith.constant 0 : index
    %116 = vector.load %arg10[%c4, %c0_54, %c0_55] : memref<5x16x128xbf16, #tpu.memory_space<vmem>>, vector<1x16x128xbf16>
    %117 = vector.shape_cast %116 : vector<1x16x128xbf16> to vector<16x128xbf16>
    %cst_56 = arith.constant dense<0.000000e+00> : vector<44x128xf32>
    %118 = tpu.matmul %115, %117, %cst_56 {dimension_numbers = #tpu.dot_dimension_numbers<[1], [0], [0], [1], [0, 0, 1, 1], [], []>} : vector<44x16xbf16>, vector<16x128xbf16>, vector<44x128xf32> -> vector<44x128xf32>
    %119 = arith.addf %114, %118 : vector<44x128xf32>
    %120 = vector.extract_strided_slice %119 {offsets = [0, 0], sizes = [12, 128], strides = [1, 1]} : vector<44x128xf32> to vector<12x128xf32>
    %121 = vector.extract_strided_slice %119 {offsets = [16, 0], sizes = [12, 128], strides = [1, 1]} : vector<44x128xf32> to vector<12x128xf32>
    %122 = vector.extract_strided_slice %119 {offsets = [32, 0], sizes = [12, 128], strides = [1, 1]} : vector<44x128xf32> to vector<12x128xf32>
    %123 = tpu.iota {dimensions = array<i32: 1>} : vector<12x128xi32>
    %c36_i32 = arith.constant 36 : i32
    %124 = vector.broadcast %c36_i32 : i32 to vector<12x128xi32>
    %125 = arith.cmpi sge, %123, %124 : vector<12x128xi32>
    %126 = arith.extui %125 : vector<12x128xi1> to vector<12x128xi32>
    %127 = arith.sitofp %126 : vector<12x128xi32> to vector<12x128xf32>
    %128 = arith.mulf %127, %122 : vector<12x128xf32>
    %129 = arith.subf %120, %128 : vector<12x128xf32>
    %130 = math.absf %129 : vector<12x128xf32>
    %131 = arith.mulf %127, %122 : vector<12x128xf32>
    %132 = arith.subf %121, %131 : vector<12x128xf32>
    %133 = math.absf %132 : vector<12x128xf32>
    %134 = arith.addf %130, %133 : vector<12x128xf32>
    %135 = vector.shape_cast %134 : vector<12x128xf32> to vector<1x12x128xf32>
    %cst_57 = arith.constant dense<0.000000e+00> : vector<1xf32>
    %136 = vector.multi_reduction <add>, %135, %cst_57 [1, 2] : vector<1x12x128xf32> to vector<1xf32>
    %137 = vector.shape_cast %136 : vector<1xf32> to vector<1x1x1xf32>
    %138 = vector.extract %137[0, 0, 0] : f32 from vector<1x1x1xf32>
    %cst_58 = arith.constant 1.000000e+00 : f32
    %139 = arith.mulf %cst_58, %91 : f32
    %140 = arith.addf %62, %139 : f32
    %cst_59 = arith.constant 5.000000e-01 : f32
    %141 = arith.mulf %cst_59, %138 : f32
    %142 = arith.addf %140, %141 : f32
    %143 = vector.broadcast %142 : f32 to vector<1x8x128xf32>
    %c0_60 = arith.constant 0 : index
    %c0_61 = arith.constant 0 : index
    %c0_62 = arith.constant 0 : index
    %144 = vector.load %arg11[%c0_60, %c0_61, %c0_62] : memref<1x8x128xf32, #tpu.memory_space<vmem>>, vector<1x8x128xf32>
    tpu.vector_store %arg11[%c0_60, %c0_61, %c0_62], %143 {strides = array<i32>} : memref<1x8x128xf32, #tpu.memory_space<vmem>>, vector<1x8x128xf32>,
    return
  }
  func.func @transform_0(%arg0: i32) -> (i32, i32, i32) {
    %c0_i32 = arith.constant 0 : i32
    %c0_i32_0 = arith.constant 0 : i32
    %c0_i32_1 = arith.constant 0 : i32
    return %arg0, %c0_i32, %c0_i32_0 : i32, i32, i32
  }
  func.func @transform_1(%arg0: i32) -> (i32, i32, i32) {
    %c0_i32 = arith.constant 0 : i32
    %c0_i32_0 = arith.constant 0 : i32
    %c0_i32_1 = arith.constant 0 : i32
    return %arg0, %c0_i32, %c0_i32_0 : i32, i32, i32
  }
  func.func @transform_2(%arg0: i32) -> (i32, i32, i32) {
    %c0_i32 = arith.constant 0 : i32
    %c0_i32_0 = arith.constant 0 : i32
    %c0_i32_1 = arith.constant 0 : i32
    return %arg0, %c0_i32, %c0_i32_0 : i32, i32, i32
  }
  func.func @transform_3(%arg0: i32) -> (i32, i32, i32) {
    %c0_i32 = arith.constant 0 : i32
    %c0_i32_0 = arith.constant 0 : i32
    %c0_i32_1 = arith.constant 0 : i32
    return %arg0, %c0_i32, %c0_i32_0 : i32, i32, i32
  }
  func.func @transform_4(%arg0: i32) -> (i32, i32, i32) {
    %c0_i32 = arith.constant 0 : i32
    %c0_i32_0 = arith.constant 0 : i32
    %c0_i32_1 = arith.constant 0 : i32
    return %arg0, %c0_i32, %c0_i32_0 : i32, i32, i32
  }
  func.func @transform_5(%arg0: i32) -> (i32, i32, i32) {
    %c0_i32 = arith.constant 0 : i32
    %c0_i32_0 = arith.constant 0 : i32
    %c0_i32_1 = arith.constant 0 : i32
    return %arg0, %c0_i32, %c0_i32_0 : i32, i32, i32
  }
  func.func @transform_6(%arg0: i32) -> (i32, i32) {
    %c0_i32 = arith.constant 0 : i32
    %c0_i32_0 = arith.constant 0 : i32
    %c0_i32_1 = arith.constant 0 : i32
    return %c0_i32, %c0_i32_0 : i32, i32
  }
  func.func @transform_7(%arg0: i32) -> (i32, i32) {
    %c0_i32 = arith.constant 0 : i32
    %c0_i32_0 = arith.constant 0 : i32
    %c0_i32_1 = arith.constant 0 : i32
    return %c0_i32, %c0_i32_0 : i32, i32
  }
  func.func @transform_8(%arg0: i32) -> (i32, i32, i32) {
    %c0_i32 = arith.constant 0 : i32
    %c0_i32_0 = arith.constant 0 : i32
    %c0_i32_1 = arith.constant 0 : i32
    %c0_i32_2 = arith.constant 0 : i32
    return %c0_i32, %c0_i32_0, %c0_i32_1 : i32, i32, i32
  }
  func.func @transform_9(%arg0: i32) -> (i32, i32, i32) {
    %c0_i32 = arith.constant 0 : i32
    %c0_i32_0 = arith.constant 0 : i32
    %c0_i32_1 = arith.constant 0 : i32
    %c0_i32_2 = arith.constant 0 : i32
    return %c0_i32, %c0_i32_0, %c0_i32_1 : i32, i32, i32
  }
  func.func @transform_10(%arg0: i32) -> (i32, i32, i32) {
    %c0_i32 = arith.constant 0 : i32
    %c0_i32_0 = arith.constant 0 : i32
    %c0_i32_1 = arith.constant 0 : i32
    return %arg0, %c0_i32, %c0_i32_0 : i32, i32, i32
  }
}

</mosaic_0001>

<bundles_post_ra>
// kernel: loss_fn.1
= control target key start
LH: loop header
LB: loop body
LE: loop exit
PB: predicated region body
PF: predicated region fallthrough
CT: control target
= control target key end

     0   :  { %s3093_s0 = inlined_call_operand.hbm [shape: f32[2,16,16], index: 0, kind: input, shape index: {}]   ;;  %s3094_s1 = inlined_call_operand.hbm [shape: f32[2,16,16], index: 1, kind: input, shape index: {}]   ;;  %s3095_s2 = inlined_call_operand.hbm [shape: f32[2,16,16], index: 2, kind: input, shape index: {}]   ;;  %s3096_s3 = inlined_call_operand.hbm [shape: f32[2,16,16], index: 3, kind: input, shape index: {}]   ;;  %s3097_s4 = inlined_call_operand.hbm [shape: f32[2,16,16], index: 4, kind: input, shape index: {}]   ;;  %s3098_s5 = inlined_call_operand.hbm [shape: f32[2,16,16], index: 5, kind: input, shape index: {}]   ;;  %s3099_s6 = inlined_call_operand.vmem [shape: bf16[16,16], index: 6, kind: input, shape index: {}, may-alias: {6,7}]   ;;  %s3100_s7 = inlined_call_operand.vmem [shape: bf16[16,16], index: 7, kind: input, shape index: {}, may-alias: {6,7}]   ;;  %s3101_s8 = inlined_call_operand.hbm [shape: f32[2,16,16], index: 8, kind: input, shape index: {}]   ;;  %s3102_s9 = inlined_call_operand.vmem [shape: bf16[5,16,128], index: 9, kind: input, shape index: {}]   ;;  %s3103_s10 = inlined_call_operand.vmem [shape: f32[2,8,128], index: 10, kind: output, shape index: {}]  }
   0x1   :  { %3114 = sst [smem:[#allocation21_spill]] %s3093_s0 }
   0x2   :  { %3115 = sst [smem:[#allocation22_spill]] %s3094_s1 }
   0x3   :  { %3116 = sst [smem:[#allocation23_spill]] %s3096_s3 }
   0x4   :  { %3117 = sst [smem:[#allocation24_spill]] %s3101_s8 }
   0x5   :  { %3118 = sst [smem:[#allocation25_spill]] %s3103_s10 }
   0x6   :  { %15 = vsyncpa [#allocation3], 0 }
   0x7   :  { %17 = vsyncpa [#allocation3 + $0x1], 0 }
   0x8   :  { %18 = vsyncpa [#allocation5], 0 }
   0x9   :  { %20 = vsyncpa [#allocation5 + $0x1], 0 }
   0xa   :  { %21 = vsyncpa [#allocation8], 0 }
   0xb   :  { %23 = vsyncpa [#allocation8 + $0x1], 0 }
   0xc   :  { %24 = vsyncpa [#allocation11], 0 }
   0xd   :  { %26 = vsyncpa [#allocation11 + $0x1], 0  ;;  %s2469_s13 = smov 0   ;;  %s2471_s14 = smov 0  }
   0xe   :  { %s2473_s15 = smov 0   ;;  %s2475_s16 = smov 0  }
   0xf LB: > { %3119 = sst [smem:[#allocation18_spill]] %s2396_s15  ;;  %s2488_s17 = sadd.s32 4294967295, %s2400_s16   ;;  %s2400_s16 = sphi %s2475_s16, %s3144_s16   ;;  %s2396_s15 = sphi %s2473_s15, %s3146_s15   ;;  %s2392_s14 = sphi %s2471_s14, %s3148_s14   ;;  %s2388_s13 = sphi %s2469_s13, %s3147_s13  }
  0x10   : > { %s2491_s18 = sadd.s32 1, %s2400_s16   ;;  %s39_s20 = sadd.s32 1, %s2396_s15 }
  0x11   : > { %3120 = sst [smem:[#allocation19_spill]] %s2491_s18  ;;  %s36_s19 = ssub.s32 %s2400_s16, %s2491_s18 }
  0x12   : > { %p37_p0 = scmp.eq.s32.totalorder %s36_s19, 0  ;;  %p46_p1 = scmp.ne.s32.totalorder %s2396_s15, %s2392_s14 }
  0x13   : > { %p47_p2 = scmp.eq.s32.totalorder %s2400_s16, 0  ;;  %p52_p3 = scmp.ne.s32.totalorder %s2392_s14, %s2388_s13 }
  0x14   : > { %s2501_s21 = scalar_select %p37_p0, %s2396_s15, %s39_s20  }
  0x15   : > { %p2503_p4 = por %p47_p2, %p46_p1  ;;  %p3104_p5 = scmp.eq.s32.totalorder %s2488_s17, 0 }
  0x16   : > { %3121 = sst [smem:[#allocation20_spill]] %s2501_s21  ;;  %p1770_p6 = scmp.ge.s32.totalorder %s2400_s16, 1 }
  0x17   : > { %p303_p7 = scmp.lt.s32.totalorder %s2400_s16, 3  ;;  %p2512_p8 = por %p3104_p5, %p52_p3 }
  0x18   : > { %s2402_s25 = smov [#allocation12]   ;;  %p2091_p12 = scmp.lt.s32.totalorder %s2400_s16, 2 }
  0x19   : > { %s3123_s23 = scalar_select %p2512_p8, 1, 0 }
  0x1a   : > { %p2516_p9 = pnand %p1770_p6, %p303_p7  ;;  %s321_s26 = sshll.u32 %s2402_s25, 4  ;;  %s322_s26 = int_to_ptr.vmem [resolvable:$true] %s321_s26 }
  0x1b   : > { %s2531_s29 = sshll.u32 %s2400_s16, 8  ;;  %p2535_p13 = pnand %p2091_p12, %p2503_p4 }
  0x1c   : > { %s3124_s24 = scalar_select %p2516_p9, 1, 0 }
  0x1d   : > { %p2067_p10 = pneg %p2516_p9  ;;  %s3127_s8 = sld [smem:[#allocation24_spill]] }
  0x1e   : > { %s3126_s30 = scalar_select %p2535_p13, 1, 0 }
  0x1f   : > { %p2524_p11 = pnand %p2067_p10, %p3104_p5 }
  0x21   : > { %p2144_p1 = pneg %p2524_p11 }
  0x23   : > { %s2142_s13 = scalar_lea.hbm %s3127_s8, 512 }
  0x24   : > { %p2143_p0 = scmp.ne.s32.totalorder %s3127_s8, %s2142_s13  ;;  %p2149_p6 = scmp.lt.u32.totalorder %s2142_s13, %s3127_s8 }
  0x26   : > { %p2145_p2 = pnand %p2144_p1, %p2143_p0 }
  0x28   : > { %p2146_p3 = pneg %p2145_p2 }
  0x2a   : > { %p2151_p4 = pnand %p2149_p6, %p2146_p3 }
  0x2c   : > { %2154 = shalt.err (!%p2151_p4)
}
  0x2d   : > { %s2155_s22 = scalar_lea.vmem %s322_s26, 512  ;;  %p2163_p5 = scmp.lt.s32.totalorder %s322_s26, %s322_s26 }
  0x2e   : > { %p2156_p7 = scmp.ne.s32.totalorder %s322_s26, %s2155_s22  ;;  %p2164_p8 = scmp.lt.s32.totalorder %s2155_s22, %s2155_s22 }
  0x30   : > { %p2158_p10 = pnand %p2156_p7, %p2144_p1  ;;  %p2165_p9 = por %p2164_p8, %p2163_p5 }
  0x32   : > { %p2159_p12 = pneg %p2158_p10 }
  0x34   : > { %p2166_p13 = pnand %p2165_p9, %p2159_p12 }
  0x36   : > { %2169 = shalt.err (!%p2166_p13)
}
  0x37   : > { %s3111_s11 = smov 128   ;;  %s2404_s12 = smov 8  }
  0x38   : > { %2070 = dma.hbm_to_vmem [thread:$0]  (!%p2524_p11), %s3127_s8, 512, %s322_s26, [#allocation11], %s3111_s11, %s3111_s11, %s2404_s12  }
  0x39   : > { %s3128_s19 = sand.u32 1, %s2396_s15   ;;  %s2563_s25 = sand.u32 1, %s2400_s16  }
  0x3a   : > { %s2560_s20 = sshll.u32 %s3128_s19, 4  ;;  %s3129_s1 = sld [smem:[#allocation22_spill]] }
  0x3b   : > { %s363_s27 = scalar_lea.vmem [#allocation4], %s2560_s20  ;;  %p3130_p8 = scmp.ne.s32.totalorder %s3126_s30, 0 }
  0x3c   : > { %s370_s10 = sshll.u32 %s363_s27, 4  ;;  %s2572_s10 = int_to_ptr.vmem [resolvable:$true] %s370_s10 }
  0x3d   : > { %p2579_p9 = pneg %p3130_p8 }
  0x40   : > { %s2569_s18 = scalar_lea.hbm %s3129_s1, %s2531_s29  ;;  %s2175_s19 = scalar_lea.hbm %s3129_s1, 512 }
  0x41   : > { %s2170_s28 = scalar_lea.hbm %s2569_s18, 256  ;;  %p2176_p0 = scmp.lt.u32.totalorder %s2569_s18, %s3129_s1 }
  0x42   : > { %p2171_p5 = scmp.ne.s32.totalorder %s2569_s18, %s2170_s28  ;;  %p2177_p1 = scmp.lt.u32.totalorder %s2175_s19, %s2170_s28 }
  0x43   : > { %p2179_p3 = scmp.lt.u32.totalorder %s2170_s28, %s2569_s18 }
  0x44   : > { %p2173_p11 = pnand %p2579_p9, %p2171_p5  ;;  %p2178_p2 = por %p2177_p1, %p2176_p0 }
  0x46   : > { %p2174_p13 = pneg %p2173_p11  ;;  %p2180_p6 = por %p2179_p3, %p2178_p2 }
  0x48   : > { %p2181_p4 = pnand %p2180_p6, %p2174_p13 }
  0x4a   : > { %2184 = shalt.err (!%p2181_p4)
}
  0x4b   : > { %s2185_s26 = scalar_lea.vmem %s2572_s10, 256  ;;  %s2405_s21 = smov [#allocation4]  }
  0x4c   : > { %p2186_p7 = scmp.ne.s32.totalorder %s2572_s10, %s2185_s26  ;;  %s2190_s13 = sshll.u32 %s2405_s21, 4  ;;  %s2191_s13 = int_to_ptr.vmem [resolvable:$false] %s2190_s13 }
  0x4d   : > { %s2192_s22 = scalar_lea.vmem %s2191_s13, 512  ;;  %p2193_p5 = scmp.lt.s32.totalorder %s2572_s10, %s2191_s13 }
  0x4e   : > { %p2188_p10 = pnand %p2186_p7, %p2579_p9  ;;  %p2194_p11 = scmp.lt.s32.totalorder %s2192_s22, %s2185_s26 }
  0x50   : > { %p2189_p12 = pneg %p2188_p10  ;;  %p2195_p0 = por %p2194_p11, %p2193_p5 }
  0x52   : > { %p2196_p1 = pnand %p2195_p0, %p2189_p12 }
  0x54   : > { %2199 = shalt.err (!%p2196_p1)
}
  0x55   : > { %s3132_s28 = scalar_lea.sflag [#allocation5], %s2563_s25  ;;  %s3133_s3 = sld [smem:[#allocation23_spill]] }
  0x56   : > { %2077 = dma.hbm_to_vmem [thread:$0]  (!%p3130_p8), %s2569_s18, 256, %s2572_s10, %s3132_s28, %s3111_s11, %s3111_s11, %s2404_s12  }
  0x57   : > { %s405_s21 = scalar_lea.vmem [#allocation7], %s2560_s20  ;;  %s3110_s22 = scalar_lea.sflag [#allocation8], %s2563_s25 }
  0x58   : > { %s412_s13 = sshll.u32 %s405_s21, 4  ;;  %s2614_s13 = int_to_ptr.vmem [resolvable:$true] %s412_s13 }
  0x5b   : > { %s2611_s26 = scalar_lea.hbm %s3133_s3, %s2531_s29  ;;  %s2205_s28 = scalar_lea.hbm %s3133_s3, 512 }
  0x5c   : > { %s2200_s1 = scalar_lea.hbm %s2611_s26, 256  ;;  %p2206_p6 = scmp.lt.u32.totalorder %s2611_s26, %s3133_s3 }
  0x5d   : > { %p2201_p13 = scmp.ne.s32.totalorder %s2611_s26, %s2200_s1  ;;  %p2207_p4 = scmp.lt.u32.totalorder %s2205_s28, %s2200_s1 }
  0x5e   : > { %p2209_p10 = scmp.lt.u32.totalorder %s2200_s1, %s2611_s26 }
  0x5f   : > { %p2203_p2 = pnand %p2201_p13, %p2579_p9  ;;  %p2208_p7 = por %p2207_p4, %p2206_p6 }
  0x61   : > { %p2204_p3 = pneg %p2203_p2  ;;  %p2210_p12 = por %p2209_p10, %p2208_p7 }
  0x63   : > { %p2211_p5 = pnand %p2210_p12, %p2204_p3 }
  0x65   : > { %2214 = shalt.err (!%p2211_p5)
}
  0x66   : > { %s2215_s21 = scalar_lea.vmem %s2614_s13, 256  ;;  %s2406_s10 = smov [#allocation7]  }
  0x67   : > { %p2216_p11 = scmp.ne.s32.totalorder %s2614_s13, %s2215_s21  ;;  %s2220_s18 = sshll.u32 %s2406_s10, 4  ;;  %s2221_s18 = int_to_ptr.vmem [resolvable:$false] %s2220_s18 }
  0x68   : > { %s2222_s19 = scalar_lea.vmem %s2221_s18, 512  ;;  %p2223_p13 = scmp.lt.s32.totalorder %s2614_s13, %s2221_s18 }
  0x69   : > { %p2218_p0 = pnand %p2216_p11, %p2579_p9  ;;  %p2224_p2 = scmp.lt.s32.totalorder %s2222_s19, %s2215_s21 }
  0x6b   : > { %p2219_p1 = pneg %p2218_p0  ;;  %p2225_p6 = por %p2224_p2, %p2223_p13 }
  0x6d   : > { %p2226_p4 = pnand %p2225_p6, %p2219_p1 }
  0x6f   : > { %2229 = shalt.err (!%p2226_p4)
}
  0x70   : > { %2083 = dma.hbm_to_vmem [thread:$0]  (!%p3130_p8), %s2611_s26, 256, %s2614_s13, %s3110_s22, %s3111_s11, %s3111_s11, %s2404_s12  }
  0x71   : > { %s3134_s0 = sld [smem:[#allocation21_spill]]  ;;  %s342_s21 = scalar_lea.vmem [#allocation2], %s2560_s20 }
  0x72   : > { %s349_s10 = sshll.u32 %s342_s21, 4  ;;  %s2656_s3 = scalar_lea.hbm %s3095_s2, %s2531_s29  ;;  %s2650_s10 = int_to_ptr.vmem [resolvable:$true] %s349_s10 }
  0x73   : > { %s3135_s8 = sand.u32 1, %s2396_s15  }
  0x74   : > { %s2660_s26 = scalar_lea.sflag [#allocation3], %s3135_s8 }
  0x77   : > { %s2647_s27 = scalar_lea.hbm %s3134_s0, %s2531_s29  ;;  %s2235_s22 = scalar_lea.hbm %s3134_s0, 512 }
  0x78   : > { %s2230_s13 = scalar_lea.hbm %s2647_s27, 256  ;;  %p2236_p12 = scmp.lt.u32.totalorder %s2647_s27, %s3134_s0 }
  0x79   : > { %p2231_p3 = scmp.ne.s32.totalorder %s2647_s27, %s2230_s13  ;;  %p2237_p5 = scmp.lt.u32.totalorder %s2235_s22, %s2230_s13 }
  0x7a   : > { %p2239_p0 = scmp.lt.u32.totalorder %s2230_s13, %s2647_s27 }
  0x7b   : > { %p2233_p7 = pnand %p2231_p3, %p2579_p9  ;;  %p2238_p11 = por %p2237_p5, %p2236_p12 }
  0x7d   : > { %p2234_p10 = pneg %p2233_p7  ;;  %p2240_p1 = por %p2239_p0, %p2238_p11 }
  0x7f   : > { %p2241_p13 = pnand %p2240_p1, %p2234_p10 }
  0x81   : > { %2244 = shalt.err (!%p2241_p13)
}
  0x82   : > { %s2245_s8 = scalar_lea.vmem %s2650_s10, 256  ;;  %s2407_s18 = smov [#allocation2]  }
  0x83   : > { %p2246_p2 = scmp.ne.s32.totalorder %s2650_s10, %s2245_s8  ;;  %s2250_s19 = sshll.u32 %s2407_s18, 4  ;;  %s2251_s19 = int_to_ptr.vmem [resolvable:$false] %s2250_s19 }
  0x84   : > { %s2252_s11 = scalar_lea.vmem %s2251_s19, 512  ;;  %p2253_p3 = scmp.lt.s32.totalorder %s2650_s10, %s2251_s19 }
  0x85   : > { %p2248_p6 = pnand %p2246_p2, %p2579_p9  ;;  %p2254_p7 = scmp.lt.s32.totalorder %s2252_s11, %s2245_s8 }
  0x87   : > { %p2249_p4 = pneg %p2248_p6  ;;  %p2255_p12 = por %p2254_p7, %p2253_p3 }
  0x89   : > { %p2256_p5 = pnand %p2255_p12, %p2249_p4 }
  0x8b   : > { %2259 = shalt.err (!%p2256_p5)
}
  0x8c   : > { %s3136_s22 = smov 128   ;;  %s384_s13 = scalar_lea.vmem [#allocation6], %s2560_s20 }
  0x8d   : > { %2074 = dma.hbm_to_vmem [thread:$0]  (!%p3130_p8), %s2647_s27, 256, %s2650_s10, %s2660_s26, %s3136_s22, %s3136_s22, %s2404_s12  }
  0x8e   : > { %s391_s1 = sshll.u32 %s384_s13, 4  ;;  %s2694_s8 = scalar_lea.hbm %s3097_s4, %s2531_s29  ;;  %s2688_s1 = int_to_ptr.vmem [resolvable:$true] %s391_s1 }
  0x8f   : > { %s2260_s18 = scalar_lea.hbm %s2656_s3, 256  ;;  %s2265_s0 = scalar_lea.hbm %s3095_s2, 512 }
  0x90   : > { %p2261_p10 = scmp.ne.s32.totalorder %s2656_s3, %s2260_s18  ;;  %p2266_p1 = scmp.lt.u32.totalorder %s2656_s3, %s3095_s2 }
  0x91   : > { %p2267_p13 = scmp.lt.u32.totalorder %s2265_s0, %s2260_s18  ;;  %p2269_p6 = scmp.lt.u32.totalorder %s2260_s18, %s2656_s3 }
  0x92   : > { %p2263_p11 = pnand %p2261_p10, %p2579_p9 }
  0x93   : > { %p2268_p2 = por %p2267_p13, %p2266_p1 }
  0x94   : > { %p2264_p0 = pneg %p2263_p11 }
  0x95   : > { %p2270_p4 = por %p2269_p6, %p2268_p2 }
  0x97   : > { %p2271_p3 = pnand %p2270_p4, %p2264_p0 }
  0x99   : > { %2274 = shalt.err (!%p2271_p3)
}
  0x9a   : > { %s2275_s10 = scalar_lea.vmem %s2688_s1, 256  ;;  %s2408_s26 = smov [#allocation6]  }
  0x9b   : > { %p2276_p7 = scmp.ne.s32.totalorder %s2688_s1, %s2275_s10  ;;  %s2280_s13 = sshll.u32 %s2408_s26, 4  ;;  %s2281_s13 = int_to_ptr.vmem [resolvable:$false] %s2280_s13 }
  0x9c   : > { %s2282_s15 = scalar_lea.vmem %s2281_s13, 512  ;;  %p2283_p10 = scmp.lt.s32.totalorder %s2688_s1, %s2281_s13 }
  0x9d   : > { %p2278_p12 = pnand %p2276_p7, %p2579_p9  ;;  %p2284_p11 = scmp.lt.s32.totalorder %s2282_s15, %s2275_s10 }
  0x9f   : > { %p2279_p5 = pneg %p2278_p12  ;;  %p2285_p1 = por %p2284_p11, %p2283_p10 }
  0xa1   : > { %p2286_p13 = pnand %p2285_p1, %p2279_p5 }
  0xa3   : > { %2289 = shalt.err (!%p2286_p13)
}
  0xa4   : > { %s3137_s0 = scalar_lea.sflag [#allocation5], %s2563_s25  ;;  %s426_s28 = scalar_lea.vmem [#allocation9], %s2560_s20 }
  0xa5   : > { %2080 = dma.hbm_to_vmem [thread:$0]  (!%p3130_p8), %s2656_s3, 256, %s2688_s1, %s3137_s0, %s3136_s22, %s3136_s22, %s2404_s12  }
  0xa6   : > { %s433_s21 = sshll.u32 %s426_s28, 4  ;;  %s2290_s18 = scalar_lea.hbm %s2694_s8, 256  ;;  %s2723_s21 = int_to_ptr.vmem [resolvable:$true] %s433_s21 }
  0xa7   : > { %p2291_p0 = scmp.ne.s32.totalorder %s2694_s8, %s2290_s18  ;;  %s2295_s27 = scalar_lea.hbm %s3097_s4, 512 }
  0xa8   : > { %p2296_p4 = scmp.lt.u32.totalorder %s2694_s8, %s3097_s4  ;;  %p2297_p3 = scmp.lt.u32.totalorder %s2295_s27, %s2290_s18 }
  0xa9   : > { %p2293_p2 = pnand %p2291_p0, %p2579_p9  ;;  %p2299_p12 = scmp.lt.u32.totalorder %s2290_s18, %s2694_s8 }
  0xaa   : > { %p2298_p7 = por %p2297_p3, %p2296_p4 }
  0xab   : > { %p2294_p6 = pneg %p2293_p2 }
  0xac   : > { %p2300_p5 = por %p2299_p12, %p2298_p7 }
  0xae   : > { %p2301_p10 = pnand %p2300_p5, %p2294_p6 }
  0xb0   : > { %2304 = shalt.err (!%p2301_p10)
}
  0xb1   : > { %s2305_s3 = scalar_lea.vmem %s2723_s21, 256  ;;  %s2409_s1 = smov [#allocation9]  }
  0xb2   : > { %p2306_p11 = scmp.ne.s32.totalorder %s2723_s21, %s2305_s3  ;;  %s2310_s13 = sshll.u32 %s2409_s1, 4  ;;  %s2311_s13 = int_to_ptr.vmem [resolvable:$false] %s2310_s13 }
  0xb3   : > { %s2312_s15 = scalar_lea.vmem %s2311_s13, 512  ;;  %p2313_p0 = scmp.lt.s32.totalorder %s2723_s21, %s2311_s13 }
  0xb4   : > { %p2308_p1 = pnand %p2306_p11, %p2579_p9  ;;  %p2314_p2 = scmp.lt.s32.totalorder %s2312_s15, %s2305_s3 }
  0xb6   : > { %p2309_p13 = pneg %p2308_p1  ;;  %p2315_p4 = por %p2314_p2, %p2313_p0 }
  0xb8   : > { %p2316_p3 = pnand %p2315_p4, %p2309_p13 }
  0xba   : > { %2319 = shalt.err (!%p2316_p3)
}
  0xbb   : > { %s3138_s0 = scalar_lea.sflag [#allocation8], %s2563_s25  ;;  %s2755_s19 = scalar_lea.hbm %s3098_s5, %s2531_s29 }
  0xbc   : > { %2086 = dma.hbm_to_vmem [thread:$0]  (!%p3130_p8), %s2694_s8, 256, %s2723_s21, %s3138_s0, %s3136_s22, %s3136_s22, %s2404_s12  }
  0xbd   : > { %s447_s11 = scalar_lea.vmem [#allocation10], %s2560_s20  ;;  %s444_s10 = scalar_lea.sflag [#allocation11], %s2563_s25 }
  0xbe   : > { %s454_s27 = sshll.u32 %s447_s11, 4  ;;  %s2320_s26 = scalar_lea.hbm %s2755_s19, 256  ;;  %s2758_s27 = int_to_ptr.vmem [resolvable:$true] %s454_s27 }
  0xbf   : > { %p2321_p6 = scmp.ne.s32.totalorder %s2755_s19, %s2320_s26  ;;  %s2325_s3 = scalar_lea.hbm %s3098_s5, 512 }
  0xc0   : > { %p2326_p5 = scmp.lt.u32.totalorder %s2755_s19, %s3098_s5  ;;  %p2327_p10 = scmp.lt.u32.totalorder %s2325_s3, %s2320_s26 }
  0xc1   : > { %p2323_p7 = pnand %p2321_p6, %p2579_p9  ;;  %p2329_p1 = scmp.lt.u32.totalorder %s2320_s26, %s2755_s19 }
  0xc2   : > { %p2328_p11 = por %p2327_p10, %p2326_p5 }
  0xc3   : > { %p2324_p12 = pneg %p2323_p7 }
  0xc4   : > { %p2330_p13 = por %p2329_p1, %p2328_p11 }
  0xc6   : > { %p2331_p0 = pnand %p2330_p13, %p2324_p12 }
  0xc8   : > { %2334 = shalt.err (!%p2331_p0)
}
  0xc9   : > { %s2335_s20 = scalar_lea.vmem %s2758_s27, 256  ;;  %s2410_s13 = smov [#allocation10]  }
  0xca   : > { %p2336_p2 = scmp.ne.s32.totalorder %s2758_s27, %s2335_s20  ;;  %s2340_s15 = sshll.u32 %s2410_s13, 4  ;;  %s2341_s15 = int_to_ptr.vmem [resolvable:$false] %s2340_s15 }
  0xcb   : > { %s2342_s0 = scalar_lea.vmem %s2341_s15, 512  ;;  %p2343_p6 = scmp.lt.s32.totalorder %s2758_s27, %s2341_s15 }
  0xcc   : > { %p2338_p4 = pnand %p2336_p2, %p2579_p9  ;;  %p2344_p7 = scmp.lt.s32.totalorder %s2342_s0, %s2335_s20 }
  0xce   : > { %p2339_p3 = pneg %p2338_p4  ;;  %p2345_p5 = por %p2344_p7, %p2343_p6 }
  0xd0   : > { %p2346_p10 = pnand %p2345_p5, %p2339_p3 }
  0xd2   : > { %2349 = shalt.err (!%p2346_p10)
}
  0xd3   : > { %2089 = dma.hbm_to_vmem [thread:$0]  (!%p3130_p8), %s2755_s19, 256, %s2758_s27, %s444_s10, %s3136_s22, %s3136_s22, %s2404_s12  }
  0xd4   : > { %p3139_p9 = scmp.ne.s32.totalorder %s3124_s24, 0 }
  0xd5   : > { %s468_s16 = sand.u32 (!%p3139_p9), 1, %s2392_s14   ;;  %p3140_p12 = scmp.ne.s32.totalorder (!%p3139_p9), %s3123_s23, 0 }
  0xd6   : > { %466 = sbr.rel (%p3139_p9) target bundleno = 1413 (0x585), region = 60  ;;  %s2790_s28 = sshll.u32 (!%p3139_p9), %s468_s16, 4 }
  0xd7   : > { %s469_s18 = scalar_lea.sflag (!%p3139_p9), [#allocation3], %s468_s16  ;;  %s472_s11 = scalar_lea.vmem (!%p3139_p9), [#allocation2], %s2790_s28 }
  0xdd   : > { %2367 = dma.done.wait (%p3140_p12), %s469_s18, 256  }
  0xde   : > { %2369 = vsyncadd (%p3140_p12), %s469_s18, 4294967040  ;;  %s477_s30 = sand.u32 1, %s2488_s17   ;;  %s481_s24 = scalar_lea.vmem [#allocation4], %s2790_s28 }
  0xdf   : > { %s478_s12 = scalar_lea.sflag [#allocation5], %s477_s30 }
  0xe0   : > { %2371 = dma.done.wait (%p3140_p12), %s478_s12, 512  }
  0xe1   : > { %2373 = vsyncadd (%p3140_p12), %s478_s12, 4294966784  ;;  %s490_s25 = scalar_lea.vmem [#allocation6], %s2790_s28  ;;  %s496_s22 = scalar_lea.sflag [#allocation8], %s477_s30 }
  0xe2   : > { %s499_s19 = scalar_lea.vmem [#allocation7], %s2790_s28 }
  0xe3   : > { %2375 = dma.done.wait (%p3140_p12), %s496_s22, 512  }
  0xe4   : > { %2377 = vsyncadd (%p3140_p12), %s496_s22, 4294966784  ;;  %s508_s27 = scalar_lea.vmem [#allocation9], %s2790_s28  ;;  %s514_s10 = scalar_lea.sflag [#allocation11], %s477_s30 }
  0xe5   : > { %s517_s26 = scalar_lea.vmem [#allocation10], %s2790_s28 }
  0xe6   : > { %2379 = dma.done.wait (%p3140_p12), %s514_s10, 256  }
  0xe7   : > { %2381 = vsyncadd (%p3140_p12), %s514_s10, 4294967040  ;;  %p3141_p8 = scmp.eq.s32.totalorder %s2488_s17, 0 }
  0xe9   : > { %2383 = dma.done.wait (%p3141_p8), [#allocation11], 512   ;;  %p3142_p11 = pmov %p3141_p8 }
  0xea   : > { %v2411_v0 = vmov 0.0   ;;  %vm2412_vm0 = vmmov 0   ;;  %v2825_v1 = vld [vmem:[%s472_s11] sm:$0xff]  ;;  %v2827_v2 = vld [vmem:[%s472_s11 + $0x8] sm:$0xff]  ;;  %vm614_vm1 = vcmask 130048   ;;  %vm1072_vm2 = vcmask 1046528  }
  0xeb   : > { %2385 = vsyncadd (%p3142_p11), [#allocation11], 4294966784  ;;  %1883 = vmatprep.subr.bf16.mxu1 %v2411_v0  ;;  %1885 = vmatprep.mubr.msk.bf16.mxu1 %vm2412_vm0, %v2411_v0  ;;  %v608_v3 = vpack.c.bf16 %v2827_v2, %v2825_v1  ;;  %v2834_v4 = vld [vmem:[%s3099_s6] sm:$0xff]   ;;  %v712_v5 = vmul.f32 %v2825_v1, %v2825_v1  ;;  %v713_v6 = vmul.f32 %v2827_v2, %v2827_v2  ;;  %v2869_v24 = vld [vmem:[#allocation12 + $0x8] sm:$0xff]  ;;  %vm1375_vm3 = vsmask.f32 6400 }
  0xec   : > { %1895 = vmatprep.subr.bf16.mxu0 %v2411_v0  ;;  %1897 = vmatprep.mubr.msk.bf16.mxu0 %vm2412_vm0, %v2411_v0  ;;  %v2853_v8 = vld [vmem:[%s3100_s7] sm:$0xff]   ;;  %v2887_v52 = vld [vmem:[%s481_s24 + $0x8] sm:$0xff]  ;;  %v2133_v55 = vld [vmem:[%s3102_s9 + $0x10] sm:$0xff]   ;;  %vm1468_vm4 = vcmask 1045504   ;;  %s2413_s16 = smov 127   ;;  %vm1096_vm6 = vcmask 129024  }
  0xed   : > { %1884 = vmatpush3.bf16.msra.mxu1 %v608_v3  ;;  %v714_v7 = vpack.c.bf16 %v713_v6, %v712_v5  ;;  %v2867_v21 = vld [vmem:[#allocation12] sm:$0xff]  ;;  %v2895_v54 = vld [vmem:[%s490_s25 + $0x8] sm:$0xff]  ;;  %vm1117_vm5 = vsmask.f32 7424  ;;  %vm1057_vm7 = vcmask 121856   ;;  %vm1569_vm9 = vcmask 1043456  }
  0xee   : > { %1889 = vmatprep.subr.bf16.mxu1 %v2411_v0  ;;  %v2882_v51 = vld [vmem:[%s481_s24] sm:$0xff]  ;;  %v2920_v61 = vld [vmem:[%s508_s27 + $0x8] sm:$0xff]  ;;  %p582_p1 = scmp.lt.s32.totalorder %s2488_s17, 1  ;;  %s3143_s21 = sld [smem:[#allocation25_spill]] }
  0xef   : > { %1896 = vmatpush3.bf16.msra.mxu0 %v714_v7  ;;  %v2891_v53 = vld [vmem:[%s490_s25] sm:$0xff]  ;;  %v2902_v56 = vpack.c.bf16 %v2887_v52, %v2882_v51  ;;  %v2134_v3 = vld [vmem:[%s3102_s9 + $0x18] sm:$0xff]   ;;  %1033 = vrot.lane.b32.xlu0 %v2882_v51, %s2413_s16 }
  0xf0   : > { %1886 = vmatmul.mubr.msk.bf16.vlgmr.msra.gmra.mrb[0].mxu1 %vm614_vm1, %v2834_v4  ;;  %1907 = vmatprep.subr.bf16.mxu0 %v2411_v0  ;;  %v2906_v57 = vpack.c.bf16 %v2895_v54, %v2891_v53  ;;  %v2916_v60 = vld [vmem:[%s508_s27] sm:$0xff]  ;;  %s3150_s17 = smov (!%p582_p1, %s2488_s17), 1 }
  0xf1   : > { %1891 = vmatprep.mubr.msk.bf16.mxu1 %vm2412_vm0, %v2411_v0  ;;  %1890 = vmatpush3.bf16.msra.mxu1 %v2853_v8  ;;  %v1289_v58 = vrot.slane %v2902_v56, 1  ;;  %v2926_v63 = vpack.c.bf16 %v2920_v61, %v2916_v60  ;;  %v1119_v6 = vshrl.u32 %v2902_v56, 16  ;;  %v1121_v7 = vshll.u32 %v2902_v56, 16 }
  0xf2   : > { %1898 = vmatmul.mubr.msk.bf16.vlgmr.msra.gmra.mrb[0].mxu0 %vm614_vm1, %v2834_v4  ;;  %1901 = vmatprep.subr.bf16.mxu1 %v2411_v0  ;;  %v1290_v59 = vrot.slane %v2906_v57, 1 }
  0xf3   : > { %1909 = vmatprep.mubr.msk.bf16.mxu0 %vm2412_vm0, %v2411_v0  ;;  %1045 = vrot.lane.b32.xlu1 %v2891_v53, %s2413_s16 }
  0xf4   : > { %v1291_v62 = vsel %vm1072_vm2, %v1289_v58, %v1290_v59  ;;  %1035 = vrot.lane.b32.xlu0 %v2887_v52, %s2413_s16 }
  0xf7   : > { %1047 = vrot.lane.b32.xlu1 %v2895_v54, %s2413_s16 }
 0x1c3   : > { %v652_v9 = vpop.f32.mrb[0].mxu1 }
 0x1c4   : > { %v1887_v10 = vpop.f32.mrb[1].mxu1 }
 0x1c5   : > { %v655_v11 = vpop.f32.mrb[2].mxu1  ;;  %v749_v12 = vpop.f32.mrb[0].mxu0  ;;  %v1130_v10 = vshrl.u32 %v2906_v57, 16 }
 0x1c6   : > { %v659_v13 = vpack.c.bf16 %v655_v11, %v652_v9  ;;  %v1888_v14 = vpop.f32.mrb[3].mxu1  ;;  %v1899_v15 = vpop.f32.mrb[1].mxu0  ;;  %v1126_v9 = vshll.u32 %v2906_v57, 16  ;;  %v1376_v11 = vrot.slane %v1119_v6, 1 }
 0x1c7   : > { %v752_v16 = vpop.f32.mrb[2].mxu0 }
 0x1c8   : > { %1892 = vmatmul.mubr.msk.bf16.vlgmr.msra.gmra.mrb[4].mxu1 %vm614_vm1, %v659_v13  ;;  %v756_v17 = vpack.c.bf16 %v752_v16, %v749_v12  ;;  %v1900_v18 = vpop.f32.mrb[3].mxu0  ;;  %v1377_v12 = vrot.slane %v1121_v7, 2  ;;  %v1379_v13 = vrot.slane %v1130_v10, 1  ;;  %v1380_v14 = vrot.slane %v1126_v9, 2 }
 0x1c9   : > { %1902 = vmatpush3.bf16.msra.mxu1 %v2853_v8  ;;  %1903 = vmatprep.mubr.msk.bf16.mxu1 %vm2412_vm0, %v2411_v0  ;;  %v1138_v18 = vshrl.u32 %v2926_v63, 16 }
 0x1ca   : > { %1913 = vmatprep.subr.bf16.mxu1 %v2411_v0  ;;  %v1378_v15 = vor.u32 %v1377_v12, %v1376_v11  ;;  %v1381_v16 = vor.u32 %v1380_v14, %v1379_v13 }
 0x1d0   : > { %1904 = vmatmul.mubr.msk.bf16.vlgmr.msra.gmra.mrb[8].mxu1 %vm614_vm1, %v756_v17  ;;  %v1134_v17 = vshll.u32 %v2926_v63, 16 }
 0x1d1   : > { %1914 = vmatpush3.bf16.msra.mxu1 %v2853_v8  ;;  %1915 = vmatprep.mubr.msk.bf16.mxu1 %vm2412_vm0, %v2411_v0 }
 0x1d2   : > { %1925 = vmatprep.subr.bf16.mxu1 %v2411_v0 }
 0x29b   : > { %v703_v19 = vpop.f32.mrb[4].mxu1 }
 0x29c   : > { %v1893_v20 = vpop.f32.mrb[5].mxu1  ;;  %v710_v25 = vmul.f32 %v703_v19, %v2867_v21  ;;  %v1382_v19 = vsel %vm1375_vm3, %v1378_v15, %v1381_v16 }
 0x29d   : > { %v706_v22 = vpop.f32.mrb[6].mxu1  ;;  %v1383_v20 = vrot.slane %v1138_v18, 1 }
 0x29e   : > { %v1894_v23 = vpop.f32.mrb[7].mxu1  ;;  %v711_v26 = vmul.f32 %v706_v22, %v2869_v24  ;;  %v803_v28 = vmul.f32 %v710_v25, %v710_v25  ;;  %v1384_v22 = vrot.slane %v1134_v17, 2 }
 0x29f   : > { %v2135_v23 = vld [vmem:[%s3102_s9 + $0x20] sm:$0xff]  }
 0x2a0   : > { %v804_v32 = vmul.f32 %v711_v26, %v711_v26 }
 0x2a3   : > { %v794_v27 = vpop.f32.mrb[8].mxu1 }
 0x2a4   : > { %v801_v29 = vmul.f32 %v794_v27, %v2867_v21  ;;  %v1905_v30 = vpop.f32.mrb[9].mxu1  ;;  %v1469_v27 = vrot.slane %v2902_v56, 2 }
 0x2a5   : > { %v797_v31 = vpop.f32.mrb[10].mxu1  ;;  %v1472_v30 = vrot.slane %v2926_v63, 2 }
 0x2a6   : > { %v805_v33 = vsub.f32 %v801_v29, %v803_v28  ;;  %v802_v34 = vmul.f32 %v797_v31, %v2869_v24  ;;  %v1906_v35 = vpop.f32.mrb[11].mxu1  ;;  %v1470_v28 = vrot.slane %v2906_v57, 2 }
 0x2a8   : > { %v807_v36 = vmax.f32 %v805_v33, 0.0  ;;  %v806_v37 = vsub.f32 %v802_v34, %v804_v32  ;;  %v1471_v29 = vsel %vm1468_vm4, %v1469_v27, %v1470_v28  ;;  %v1473_v31 = vsel %vm1468_vm4, %v1470_v28, %v1472_v30 }
 0x2aa   : > { %v809_v38 = vmax.f32 %v807_v36, 1e-09  ;;  %v808_v39 = vmax.f32 %v806_v37, 0.0 }
 0x2ac   : > { %2138 = vrcp.f32 %v809_v38  ;;  %v810_v40 = vmax.f32 %v808_v39, 1e-09 }
 0x2ae   : > { %2140 = vrcp.f32 %v810_v40  ;;  %v2136_v40 = vld [vmem:[%s3102_s9 + $0x8] sm:$0xff]  }
 0x2b6   : > { %v2139_v41 = vpop.eup %2138 }
 0x2b7   : > { %v813_v42 = vmul.f32 %v2139_v41, %v807_v36  ;;  %v1123_v41 = vrot.slane %v1121_v7, 1  ;;  %v1027_v7 = vsub.f32 %v2882_v51, %v2916_v60 }
 0x2b8   : > { %v2141_v43 = vpop.eup %2140 }
 0x2b9   : > { %v815_v44 = vsub.f32 1.0, %v813_v42  ;;  %v814_v45 = vmul.f32 %v2141_v43, %v808_v39  ;;  %v1073_v13 = vrot.slane %v1027_v7, 1 }
 0x2bb   : > { %v817_v46 = vmul.f32 %v815_v44, %v710_v25  ;;  %v816_v47 = vsub.f32 1.0, %v814_v45  ;;  %v819_v48 = vpack.c.bf16 %v814_v45, %v813_v42  ;;  %v1385_v25 = vor.u32 %v1384_v22, %v1383_v20 }
 0x2bc   : > { %v1128_v44 = vrot.slane %v1126_v9, 1  ;;  %v1029_v9 = vsub.f32 %v2891_v53, %v2916_v60 }
 0x2bd   : > { %v818_v49 = vmul.f32 %v816_v47, %v711_v26  ;;  %1908 = vmatpush3.bf16.msra.mxu0 %v819_v48  ;;  %v1386_v26 = vsel %vm1375_vm3, %v1381_v16, %v1385_v25  ;;  %v1136_v48 = vrot.slane %v1134_v17, 1  ;;  %v1046_v17 = vpop.permute.xlu1 %1045 }
 0x2be   : > { %1919 = vmatprep.subr.bf16.mxu0 %v2411_v0  ;;  %v1132_v47 = vor.u32 %v1130_v10, %v1128_v44  ;;  %v1030_v10 = vsub.f32 %v2895_v54, %v2920_v61  ;;  %v1084_v15 = vrot.slane %v1029_v9, 1 }
 0x2bf   : > { %v910_v50 = vpack.c.bf16 %v818_v49, %v817_v46  ;;  %v2137_v46 = vld [vmem:[%s3102_s9] sm:$0xff]  }
 0x2c0   : > { %1910 = vmatmul.mubr.msk.bf16.vlgmr.msra.gmra.mrb[4].mxu0 %vm614_vm1, %v2834_v4  ;;  %v1137_v49 = vsel %vm1117_vm5, %v1132_v47, %v1136_v48  ;;  %v1085_v16 = vrot.slane %v1030_v10, 1 }
 0x2c1   : > { %1920 = vmatpush3.bf16.msra.mxu0 %v910_v50  ;;  %1921 = vmatprep.mubr.msk.bf16.mxu0 %vm2412_vm0, %v2411_v0  ;;  %v1140_v50 = vor.u32 %v1138_v18, %v1136_v48  ;;  %v1034_v18 = vpop.permute.xlu0 %1033 }
 0x2c2   : > { %1959 = vmatprep.subr.bf16.mxu0 %v2411_v0  ;;  %v1086_v20 = vsel %vm1072_vm2, %v1084_v15, %v1085_v16  ;;  %v606_v15 = vld [vmem:[#allocation12 + $0x10] sm:$0xff] }
 0x2c8   : > { %1922 = vmatmul.mubr.msk.bf16.vlgmr.msra.gmra.mrb[8].mxu0 %vm614_vm1, %v2834_v4  ;;  %v1292_v4 = vrot.slane %v2926_v63, 1 }
 0x2c9   : > { %1960 = vmatpush3.bf16.msra.mxu0 %v2133_v55  ;;  %1961 = vmatprep.mubr.msk.bf16.mxu0 %vm2412_vm0, %v2411_v0 }
 0x2ca   : > { %1973 = vmatprep.subr.bf16.mxu0 %v2411_v0  ;;  %v1293_v5 = vsel %vm1072_vm2, %v1290_v59, %v1292_v4 }
 0x2d0   : > { %1962 = vmatmul.mubr.msk.bf16.vlgmr.msra.gmra.mrb[12].mxu0 %vm614_vm1, %v1291_v62 }
 0x2d1   : > { %1965 = vmatprep.mubr.msk.bf16.mxu0 %vm2412_vm0, %v2411_v0  ;;  %1974 = vmatpush3.bf16.msra.mxu0 %v2134_v3 }
 0x2d2   : > { %1987 = vmatprep.subr.bf16.mxu0 %v2411_v0 }
 0x2d8   : > { %1966 = vmatmul.mubr.msk.bf16.gmra.mrb[16].mxu0 %vm614_vm1, %v1293_v5 }
 0x2d9   : > { %1969 = vmatprep.mubr.msk.bf16.mxu0 %vm2412_vm0, %v2411_v0 }
 0x2e0   : > { %1970 = vmatmul.mubr.msk.bf16.gmra.mrb[20].mxu0 %vm614_vm1, %v1292_v4 }
 0x2e1   : > { %1975 = vmatprep.mubr.msk.bf16.mxu0 %vm2412_vm0, %v2411_v0 }
 0x2e8   : > { %1976 = vmatmul.mubr.msk.bf16.vlgmr.msra.gmra.mrb[12].mxu0 %vm614_vm1, %v1382_v19 }
 0x2e9   : > { %1979 = vmatprep.mubr.msk.bf16.mxu0 %vm2412_vm0, %v2411_v0  ;;  %1988 = vmatpush3.bf16.msra.mxu0 %v2135_v23 }
 0x2f0   : > { %1980 = vmatmul.mubr.msk.bf16.gmra.mrb[16].mxu0 %vm614_vm1, %v1386_v26  ;;  %v1090_v26 = vsub.f32 %v1030_v10, %v1085_v16 }
 0x2f1   : > { %1983 = vmatprep.mubr.msk.bf16.mxu0 %vm2412_vm0, %v2411_v0 }
 0x2f8   : > { %1984 = vmatmul.mubr.msk.bf16.gmra.mrb[20].mxu0 %vm614_vm1, %v1385_v25  ;;  %v1089_v25 = vsub.f32 %v1029_v9, %v1086_v20 }
 0x2f9   : > { %1989 = vmatprep.mubr.msk.bf16.mxu0 %vm2412_vm0, %v2411_v0 }
 0x300   : > { %1990 = vmatmul.mubr.msk.bf16.vlgmr.msra.gmra.mrb[12].mxu0 %vm614_vm1, %v1471_v29  ;;  %v1091_v29 = vand.u32 2147483647, %v1089_v25 }
 0x301   : > { %1993 = vmatprep.mubr.msk.bf16.mxu0 %vm2412_vm0, %v2411_v0 }
 0x308   : > { %1994 = vmatmul.mubr.msk.bf16.gmra.mrb[16].mxu0 %vm614_vm1, %v1473_v31  ;;  %v1036_v31 = vpop.permute.xlu0 %1035 }
 0x309   : > { %1997 = vmatprep.mubr.msk.bf16.mxu0 %vm2412_vm0, %v2411_v0 }
 0x310   : > { %1998 = vmatmul.mubr.msk.bf16.gmra.mrb[20].mxu0 %vm614_vm1, %v1472_v30  ;;  %v1048_v30 = vpop.permute.xlu1 %1047 }
 0x393   : > { %v854_v32 = vpop.f32.mrb[4].mxu0 }
 0x394   : > { %v1911_v33 = vpop.f32.mrb[5].mxu0 }
 0x395   : > { %v857_v34 = vpop.f32.mrb[6].mxu0  ;;  %v1051_v33 = vsub.f32 %v2891_v53, %v1046_v17 }
 0x396   : > { %v861_v35 = vpack.c.bf16 %v857_v34, %v854_v32  ;;  %v1912_v36 = vpop.f32.mrb[7].mxu0  ;;  %v1092_v32 = vand.u32 2147483647, %v1090_v26  ;;  %v1039_v34 = vsub.f32 %v2882_v51, %v1034_v18 }
 0x397   : > { %v1040_v36 = vsub.f32 %v2887_v52, %v1036_v31 }
 0x398   : > { %1916 = vmatmul.mubr.msk.bf16.vlgmr.msra.gmra.mrb[12].mxu1 %vm614_vm1, %v861_v35  ;;  %v1052_v35 = vsub.f32 %v2895_v54, %v1048_v30 }
 0x399   : > { %1926 = vmatpush3.bf16.msra.mxu1 %v2853_v8  ;;  %1927 = vmatprep.mubr.msk.bf16.mxu1 %vm2412_vm0, %v2411_v0  ;;  %v1124_v8 = vor.u32 %v1123_v41, %v1119_v6 }
 0x39a   : > { %1931 = vmatprep.subr.bf16.mxu1 %v2411_v0  ;;  %v1054_v41 = vand.u32 2147483647, %v1052_v35 }
 0x39b   : > { %v945_v37 = vpop.f32.mrb[8].mxu0  ;;  %v1129_v45 = vsel %vm1117_vm5, %v1124_v8, %v1128_v44 }
 0x39c   : > { %v1923_v38 = vpop.f32.mrb[9].mxu0 }
 0x39d   : > { %v948_v39 = vpop.f32.mrb[10].mxu0 }
 0x39e   : > { %v952_v42 = vpack.c.bf16 %v948_v39, %v945_v37  ;;  %v1924_v43 = vpop.f32.mrb[11].mxu0  ;;  %v1053_v39 = vand.u32 2147483647, %v1051_v33 }
 0x3a0   : > { %1928 = vmatmul.mubr.msk.bf16.vlgmr.msra.gmra.mrb[16].mxu1 %vm614_vm1, %v952_v42  ;;  %v1042_v42 = vand.u32 2147483647, %v1040_v36 }
 0x3a1   : > { %1932 = vmatpush3.bf16.msra.mxu1 %v2136_v40  ;;  %1933 = vmatprep.mubr.msk.bf16.mxu1 %vm2412_vm0, %v2411_v0  ;;  %v1041_v40 = vand.u32 2147483647, %v1039_v34 }
 0x3a2   : > { %1945 = vmatprep.subr.bf16.mxu1 %v2411_v0 }
 0x3a3   : > { %v1055_v44 = vadd.f32 %v1053_v39, %v1041_v40  ;;  %v1552_v39 = vlaneseq }
 0x3a8   : > { %1934 = vmatmul.mubr.msk.bf16.vlgmr.msra.gmra.mrb[20].mxu1 %vm614_vm1, %v1129_v45  ;;  %v1056_v45 = vadd.f32 %v1054_v41, %v1042_v42 }
 0x3a9   : > { %1946 = vmatpush3.bf16.msra.mxu1 %v2137_v46  ;;  %1937 = vmatprep.mubr.msk.bf16.mxu1 %vm2412_vm0, %v2411_v0  ;;  %v1058_v46 = vsel %vm1057_vm7, %v1055_v44, 0.0 }
 0x3aa   : > { %v1059_v54 = vsel %vm1057_vm7, %v1056_v45, 0.0 }
 0x3ab   : > { %v1060_v47 = vadd.f32 %v1059_v54, %v1058_v46 }
 0x3ad   : > { %1061 = vadd.xlane.f32.xlu1 %v1060_v47 }
 0x3b0   : > { %1938 = vmatmul.mubr.msk.bf16.gmra.mrb[24].mxu1 %vm614_vm1, %v1137_v49 }
 0x3b1   : > { %1941 = vmatprep.mubr.msk.bf16.mxu1 %vm2412_vm0, %v2411_v0 }
 0x3b8   : > { %1942 = vmatmul.mubr.msk.bf16.gmra.mrb[28].mxu1 %vm614_vm1, %v1140_v50  ;;  %v1005_v50 = vsub.f32 %v2916_v60, %v2882_v51 }
 0x3b9   : > { %1947 = vmatprep.mubr.msk.bf16.mxu1 %vm2412_vm0, %v2411_v0 }
 0x3c0   : > { %1948 = vmatmul.mubr.msk.bf16.vlgmr.msra.gmra.mrb[20].mxu1 %vm614_vm1, %v2902_v56 }
 0x3c1   : > { %1951 = vmatprep.mubr.msk.bf16.mxu1 %vm2412_vm0, %v2411_v0 }
 0x3c8   : > { %1952 = vmatmul.mubr.msk.bf16.gmra.mrb[24].mxu1 %vm614_vm1, %v2906_v57 }
 0x3c9   : > { %1955 = vmatprep.mubr.msk.bf16.mxu1 %vm2412_vm0, %v2411_v0 }
 0x3d0   : > { %1956 = vmatmul.mubr.msk.bf16.gmra.mrb[28].mxu1 %vm614_vm1, %v2926_v63  ;;  %v1028_v63 = vsub.f32 %v2887_v52, %v2920_v61 }
 0x3d2   : > { %v1074_v14 = vrot.slane %v1028_v63, 1 }
 0x3d3   : > { %v3021_v55 = vpop.f32.mrb[12].mxu0 }
 0x3d4   : > { %v1991_v58 = vpop.f32.mrb[13].mxu0  ;;  %v1075_v19 = vsel %vm1072_vm2, %v1073_v13, %v1074_v14  ;;  %v1079_v23 = vsub.f32 %v1028_v63, %v1074_v14 }
 0x3d5   : > { %v3023_v59 = vpop.f32.mrb[14].mxu0  ;;  %v1078_v22 = vsub.f32 %v1027_v7, %v1075_v19  ;;  %v597_v7 = vld [vmem:[%s517_s26] sm:$0xff] }
 0x3d6   : > { %v1992_v62 = vpop.f32.mrb[15].mxu0  ;;  %v1081_v28 = vand.u32 2147483647, %v1079_v23  ;;  %v607_v23 = vld [vmem:[#allocation12 + $0x18] sm:$0xff] }
 0x3d7   : > { %v1080_v27 = vand.u32 2147483647, %v1078_v22  ;;  %v594_v22 = vld [vmem:[%s499_s19 + $0x8] sm:$0xff] }
 0x3d8   : > { %v1094_v38 = vadd.f32 %v1092_v32, %v1081_v28 }
 0x3d9   : > { %v1093_v37 = vadd.f32 %v1091_v29, %v1080_v27 }
 0x3da   : > { %v1097_v8 = vsel %vm1096_vm6, %v1094_v38, 0.0 }
 0x3db   : > { %v3025_v3 = vpop.f32.mrb[16].mxu0  ;;  %v1095_v43 = vsel %vm614_vm1, %v1093_v37, 0.0 }
 0x3dc   : > { %v1995_v56 = vpop.f32.mrb[17].mxu0  ;;  %v1098_v53 = vadd.f32 %v1097_v8, %v1095_v43  ;;  %v1553_v43 = vand.u32 127, %v1552_v39 }
 0x3dd   : > { %v3027_v4 = vpop.f32.mrb[18].mxu0  ;;  %v1006_v56 = vsub.f32 %v2920_v61, %v2887_v52  ;;  %v593_v52 = vld [vmem:[%s499_s19] sm:$0xff]  ;;  %s1799_s19 = sshll.u32 %s3150_s17, 3 }
 0x3de   : > { %v1996_v5 = vpop.f32.mrb[19].mxu0  ;;  %1099 = vadd.xlane.f32.xlu0 %v1098_v53  ;;  %vm1554_vm8 = vcmp.ge.s32.totalorder %v1553_v43, 36  ;;  %s585_s3 = scalar_lea.vmem %s3143_s21, %s1799_s19 }
 0x3df   : > { %v1008_v9 = vand.u32 2147483647, %v1006_v56  ;;  %v1838_v46 = vsel %vm1554_vm8, 1.0, %v2411_v0 }
 0x3e3   : > { %v3029_v6 = vpop.f32.mrb[20].mxu0 }
 0x3e4   : > { %v1999_v57 = vpop.f32.mrb[21].mxu0 }
 0x3e5   : > { %v3039_v11 = vpop.f32.mrb[22].mxu0  ;;  %v1007_v57 = vand.u32 2147483647, %v1005_v50 }
 0x3e6   : > { %v2000_v12 = vpop.f32.mrb[23].mxu0 }
 0x3e7   : > { %v598_v12 = vld [vmem:[%s517_s26 + $0x8] sm:$0xff]  ;;  %v1009_v14 = vmul.f32 %v1007_v57, %v597_v7 }
 0x3e8   : > { %v1010_v20 = vmul.f32 %v1008_v9, %v598_v12 }
 0x3e9   : > { %v1011_v26 = vmul.f32 %v1009_v14, %v606_v15 }
 0x3ea   : > { %v1012_v28 = vmul.f32 %v1010_v20, %v607_v23 }
 0x46b   : > { %v899_v48 = vpop.f32.mrb[12].mxu1  ;;  %v1100_v12 = vpop.xlane.xlu0 %1099 }
 0x46c   : > { %v1917_v49 = vpop.f32.mrb[13].mxu1  ;;  %v906_v5 = vmul.f32 %v899_v48, %v2867_v21 }
 0x46d   : > { %v902_v58 = vpop.f32.mrb[14].mxu1 }
 0x46e   : > { %v1918_v62 = vpop.f32.mrb[15].mxu1  ;;  %v907_v63 = vmul.f32 %v902_v58, %v2869_v24  ;;  %v908_v13 = vmul.f32 %v906_v5, %v2825_v1 }
 0x470   : > { %v909_v16 = vmul.f32 %v907_v63, %v2827_v2 }
 0x473   : > { %v990_v10 = vpop.f32.mrb[16].mxu1 }
 0x474   : > { %v997_v51 = vmul.f32 %v990_v10, %v2867_v21  ;;  %v1929_v60 = vpop.f32.mrb[17].mxu1  ;;  %v1062_v10 = vpop.xlane.xlu1 %1061 }
 0x475   : > { %v993_v61 = vpop.f32.mrb[18].mxu1 }
 0x476   : > { %v999_v17 = vadd.f32 %v997_v51, %v908_v13  ;;  %v998_v18 = vmul.f32 %v993_v61, %v2869_v24  ;;  %v1930_v19 = vpop.f32.mrb[19].mxu1  ;;  %v1063_v13 = vrot.slane %v1062_v10, 4 }
 0x478   : > { %v1001_v25 = vsub.f32 %v593_v52, %v999_v17  ;;  %v1000_v1 = vadd.f32 %v998_v18, %v909_v16  ;;  %v1064_v51 = vadd.f32 %v1063_v13, %v1062_v10 }
 0x47a   : > { %v1003_v21 = vand.u32 2147483647, %v1001_v25  ;;  %v1002_v27 = vsub.f32 %v594_v22, %v1000_v1  ;;  %v1065_v14 = vrot.slane %v1064_v51, 2 }
 0x47c   : > { %v1004_v29 = vand.u32 2147483647, %v1002_v27  ;;  %v1013_v30 = vadd.f32 %v1011_v26, %v1003_v21  ;;  %v1066_v16 = vadd.f32 %v1065_v14, %v1064_v51 }
 0x47e   : > { %v1014_v31 = vadd.f32 %v1012_v28, %v1004_v29  ;;  %v1015_v32 = vsel %vm614_vm1, %v1013_v30, 0.0  ;;  %v1067_v20 = vrot.slane %v1066_v16, 1 }
 0x480   : > { %v1016_v2 = vsel %vm614_vm1, %v1014_v31, 0.0  ;;  %v1068_v1 = vadd.f32 %v1067_v20, %v1066_v16 }
 0x481   : > { %v1017_v33 = vadd.f32 %v1016_v2, %v1015_v32 }
 0x483   : > { %1018 = vadd.xlane.f32.xlu0 %v1017_v33 }
 0x493   : > { %v1259_v24 = vpop.f32.mrb[20].mxu1 }
 0x494   : > { %v2001_v34 = vadd.f32 %v3021_v55, %v1259_v24  ;;  %v1949_v35 = vpop.f32.mrb[21].mxu1 }
 0x495   : > { %v1262_v36 = vpop.f32.mrb[22].mxu1 }
 0x496   : > { %v2002_v37 = vadd.f32 %v3023_v59, %v1262_v36  ;;  %v1950_v38 = vpop.f32.mrb[23].mxu1 }
 0x49b   : > { %v1267_v40 = vpop.f32.mrb[24].mxu1 }
 0x49c   : > { %v2003_v41 = vadd.f32 %v3025_v3, %v1267_v40  ;;  %v1953_v42 = vpop.f32.mrb[25].mxu1 }
 0x49d   : > { %v1270_v8 = vpop.f32.mrb[26].mxu1 }
 0x49e   : > { %v2004_v44 = vadd.f32 %v3027_v4, %v1270_v8  ;;  %v1954_v53 = vpop.f32.mrb[27].mxu1 }
 0x4a3   : > { %v1275_v45 = vpop.f32.mrb[28].mxu1 }
 0x4a4   : > { %v2005_v55 = vadd.f32 %v3029_v6, %v1275_v45  ;;  %v1957_v54 = vpop.f32.mrb[29].mxu1 }
 0x4a5   : > { %v1278_v47 = vpop.f32.mrb[30].mxu1 }
 0x4a6   : > { %v1557_v59 = vmul.f32 %v2005_v55, %v1838_v46  ;;  %v2006_v48 = vadd.f32 %v3039_v11, %v1278_v47  ;;  %v1958_v49 = vpop.f32.mrb[31].mxu1  ;;  %v1101_v11 = vrot.slane %v1100_v12, 4 }
 0x4a8   : > { %v1559_v50 = vsub.f32 %v2001_v34, %v1557_v59  ;;  %v1563_v3 = vsub.f32 %v2003_v41, %v1557_v59  ;;  %v1558_v58 = vmul.f32 %v2006_v48, %v1838_v46  ;;  %v1102_v60 = vadd.f32 %v1101_v11, %v1100_v12 }
 0x4aa   : > { %v1561_v62 = vand.u32 2147483647, %v1559_v50  ;;  %v1565_v56 = vand.u32 2147483647, %v1563_v3  ;;  %v1560_v5 = vsub.f32 %v2002_v37, %v1558_v58  ;;  %v1564_v4 = vsub.f32 %v2004_v44, %v1558_v58 }
 0x4ab   : > { %v1103_v52 = vrot.slane %v1102_v60, 2 }
 0x4ac   : > { %v1562_v57 = vand.u32 2147483647, %v1560_v5  ;;  %v1566_v7 = vand.u32 2147483647, %v1564_v4  ;;  %v1567_v63 = vadd.f32 %v1565_v56, %v1561_v62 }
 0x4ad   : > { %v1104_v18 = vadd.f32 %v1103_v52, %v1102_v60 }
 0x4ae   : > { %v1568_v0 = vadd.f32 %v1566_v7, %v1562_v57 }
 0x4af   : > { %v1105_v23 = vrot.slane %v1104_v18, 1 }
 0x4b0   : > { %v1570_v9 = vsel %vm1569_vm9, %v1568_v0, 0.0 }
 0x4b1   : > { %v1571_v6 = vadd.f32 %v1570_v9, %v1567_v63  ;;  %v1106_v21 = vadd.f32 %v1105_v23, %v1104_v18 }
 0x4b3   : > { %1572 = vadd.xlane.f32.xlu0 %v1571_v6 }
 0x510   : > { %v1019_v61 = vpop.xlane.xlu0 %1018 }
 0x511   : > { %v1020_v15 = vrot.slane %v1019_v61, 4 }
 0x513   : > { %v1021_v17 = vadd.f32 %v1020_v15, %v1019_v61 }
 0x515   : > { %v1022_v19 = vrot.slane %v1021_v17, 2 }
 0x517   : > { %v1023_v22 = vadd.f32 %v1022_v19, %v1021_v17 }
 0x519   : > { %v1024_v25 = vrot.slane %v1023_v22, 1 }
 0x51b   : > { %v1025_v26 = vadd.f32 %v1024_v25, %v1023_v22 }
 0x51d   : > { %2043 = vpush %v1025_v26 }
 0x51e   : > { %2045 = vpush %v1068_v1 }
 0x51f   : > { %2047 = vpush %v1106_v21 }
 0x540   : > { %v1573_v27 = vpop.xlane.xlu0 %1572 }
 0x541   : > { %v1574_v28 = vrot.slane %v1573_v27, 4 }
 0x543   : > { %v1575_v29 = vadd.f32 %v1574_v28, %v1573_v27 }
 0x545   : > { %v1576_v30 = vrot.slane %v1575_v29, 2 }
 0x547   : > { %v1577_v31 = vadd.f32 %v1576_v30, %v1575_v29 }
 0x549   : > { %v1578_v32 = vrot.slane %v1577_v31, 1 }
 0x54b   : > { %v1579_v2 = vadd.f32 %v1578_v32, %v1577_v31 }
 0x54d   : > { %2049 = vpush %v1579_v2 }
 0x54e   : > { %s2044_s28 = spop %2043 }
 0x54f   : > { %s2046_s24 = spop %2045 }
 0x550   : > { %s2048_s25 = spop %2047 }
 0x551   : > { %s1108_s22 = sadd.f32 %s2048_s25, %s2046_s24 }
 0x553   : > { %s1581_s10 = sadd.f32 %s2044_s28, %s1108_s22 }
 0x57e   : > { %s2050_s27 = spop %2049 }
 0x57f   : > { %s1582_s26 = smul.f32 0.5, %s2050_s27 }
 0x581   : > { %s1583_s29 = sadd.f32 %s1582_s26, %s1581_s10 }
 0x583   : > { %v1584_v33 = vstv %s1583_s29 }
 0x584   : > { %1585 = vst [vmem:[%s585_s3] sm:$0xff] %v1584_v33 }
 0x585 PF: > { %s3144_s16 = sld [smem:[#allocation19_spill]]  ;;  %s3145_s1 = sld [smem:[#allocation18_spill]] }
 0x586   : > { %s3146_s15 = sld [smem:[#allocation20_spill]]  ;;  %s3147_s13 = smov %s2392_s14 }
 0x58b   : > { %p29_p13 = scmp.ge.s32.totalorder %s3144_s16, 4   ;;  %s3148_s14 = smov %s3145_s1 }
 0x58d   :  { %31 = sbr.rel (!%p29_p13) target bundleno = 15 (0xf), region = 170 }
 0x594   :  { %1605 = vsyncpa [#allocation3], 1 }
 0x595   :  { %1607 = vsyncpa [#allocation3 + $0x1], 1 }
 0x596   :  { %1608 = vsyncpa [#allocation5], 1 }
 0x597   :  { %1610 = vsyncpa [#allocation5 + $0x1], 1 }
 0x598   :  { %1611 = vsyncpa [#allocation8], 1 }
 0x599   :  { %1613 = vsyncpa [#allocation8 + $0x1], 1 }
 0x59a   :  { %1614 = vsyncpa [#allocation11], 1 }
 0x59b   :  { %1616 = vsyncpa [#allocation11 + $0x1], 1 }

</bundles_post_ra>
